<compile_context>
chip_gen: v7x
topology: tpu7x:2x2x1
jax: 0.10.0
libtpu: 0.0.40
codegen_flags: <defaults>
</compile_context>

<pallas_src>
import jax
import jax.numpy as jnp
from jax.experimental import pallas as pl
from jax.experimental.pallas import tpu as pltpu

BN_EPS = 1e-5

_VMEM = pl.BlockSpec(memory_space=pltpu.MemorySpace.VMEM)


# ---------------------------------------------------------------------------
# Pallas kernels
# ---------------------------------------------------------------------------
def _conv_relu_bn_kernel(p_ref, w_ref, gb_ref, o_ref):
    """Fused Conv2d(bias=False) -> ReLU -> BatchNorm2d (batch statistics).

    p_ref : (CK, R)    transposed im2col patches, R = N*Ho*Wo on the lane axis
    w_ref : (Cout, CK) conv weight, PyTorch weight.reshape(Cout, Cin*KH*KW)
    gb_ref: (Cout, 2)  column 0 = BN gamma, column 1 = BN beta
    o_ref : (Cout, R)  lane-dense output
    """
    # Conv as a single MXU matmul, f32 accumulation.
    y = jnp.dot(w_ref[...], p_ref[...], preferred_element_type=jnp.float32)
    # ReLU.
    y = jnp.maximum(y, 0.0)
    # BatchNorm2d over (N, H, W) == the lane axis here; single pass over y
    # using per-channel sum and sum-of-squares (biased variance, eps=1e-5).
    inv_r = 1.0 / y.shape[1]
    s1 = jnp.sum(y, axis=1, keepdims=True)                 # (Cout, 1)
    s2 = jnp.sum(y * y, axis=1, keepdims=True)             # (Cout, 1)
    mean = s1 * inv_r
    var = s2 * inv_r - mean * mean
    inv_std = jax.lax.rsqrt(var + BN_EPS)
    gamma = gb_ref[:, 0:1]
    beta = gb_ref[:, 1:2]
    o_ref[...] = ((y - mean) * (inv_std * gamma) + beta).astype(o_ref.dtype)


def _head_kernel(f_ref, w_ref, o_ref):
    """1x1-conv classifier head + log_softmax over the class axis.

    f_ref: (Cf, N)  globally average-pooled features
    w_ref: (K, Cf)  1x1 conv weight (K = 10 classes, bias=False)
    o_ref: (K, N)   log-probabilities
    """
    z = jnp.dot(w_ref[...], f_ref[...], preferred_element_type=jnp.float32)
    m = jnp.max(z, axis=0, keepdims=True)
    lse = jnp.log(jnp.sum(jnp.exp(z - m), axis=0, keepdims=True)) + m
    o_ref[...] = (z - lse).astype(o_ref.dtype)


# ---------------------------------------------------------------------------
# Wrappers (layout glue is transpose-free by construction)
# ---------------------------------------------------------------------------
def _im2col_cmajor(x_cnhw, kh_kw, padding):
    """Transposed im2col (CK, R) for channels-major activations (stride=1).

    Row order  c*KH*KW + kh*KW + kw  matches weight.reshape(Cout, -1);
    column order n*Ho*Wo + ho*Wo + wo matches the (Cout, N, Ho, Wo) output.
    Built from pad + static slices + stack + reshape only (no transposes).
    """
    KH, KW = kh_kw
    C, N, H, W = x_cnhw.shape
    Ho = H + 2 * padding - KH + 1
    Wo = W + 2 * padding - KW + 1
    xp = jnp.pad(x_cnhw, ((0, 0), (0, 0), (padding, padding), (padding, padding)))
    cols = [xp[:, :, kh:kh + Ho, kw:kw + Wo]
            for kh in range(KH) for kw in range(KW)]
    patches = jnp.stack(cols, axis=1)                      # (C, KH*KW, N, Ho, Wo)
    return patches.reshape(C * KH * KW, N * Ho * Wo), Ho, Wo


def conv_relu_bn(x_cnhw, weight, gamma, beta, *, padding):
    """One Conv2d(bias=False, stride=1) -> ReLU -> BatchNorm2d block.

    x_cnhw: (Cin, N, H, W) channels-major activations.  Returns (Cout, N, Ho, Wo).
    """
    Cout, Cin, KH, KW = weight.shape
    C, N, H, W = x_cnhw.shape
    assert C == Cin
    patches, Ho, Wo = _im2col_cmajor(x_cnhw, (KH, KW), padding)
    CK, R = patches.shape
    w_mat = weight.reshape(Cout, CK).astype(jnp.float32)
    gb = jnp.stack([gamma, beta], axis=1).astype(jnp.float32)      # (Cout, 2)

    cost = pl.CostEstimate(
        flops=2 * Cout * CK * R,
        transcendentals=0,
        bytes_accessed=4 * (CK * R + Cout * CK + Cout * 2 + Cout * R),
    )
    out = pl.pallas_call(
        _conv_relu_bn_kernel,
        out_shape=jax.ShapeDtypeStruct((Cout, R), jnp.float32),
        in_specs=[_VMEM, _VMEM, _VMEM],
        out_specs=_VMEM,
        cost_estimate=cost,
    )(patches.astype(jnp.float32), w_mat, gb)
    return out.reshape(Cout, N, Ho, Wo)


def max_pool_2x2(x_cnhw):
    """MaxPool2d(2, 2) on channels-major activations (pure layout glue)."""
    C, N, H, W = x_cnhw.shape
    Hh, Wh = H // 2, W // 2
    x = x_cnhw[:, :, :Hh * 2, :Wh * 2].reshape(C, N, Hh, 2, Wh, 2)
    return jnp.max(x, axis=(3, 5))


def gap_linear_logsoftmax(x_cnhw, w_head):
    """AdaptiveAvgPool2d((1,1)) -> Conv2d(Cf, 10, 1, bias=False) -> log_softmax."""
    K, Cf = w_head.shape[0], w_head.shape[1]
    C, N, H, W = x_cnhw.shape
    assert C == Cf
    feat = jnp.mean(x_cnhw, axis=(2, 3))                   # (Cf, N) global avg pool
    cost = pl.CostEstimate(
        flops=2 * K * Cf * N,
        transcendentals=K * N,
        bytes_accessed=4 * (Cf * N + K * Cf + K * N),
    )
    logp = pl.pallas_call(
        _head_kernel,
        out_shape=jax.ShapeDtypeStruct((K, N), jnp.float32),
        in_specs=[_VMEM, _VMEM],
        out_specs=_VMEM,
        cost_estimate=cost,
    )(feat.astype(jnp.float32), w_head.reshape(K, Cf).astype(jnp.float32))
    return logp.T                                          # (N, K)


# (out_channels, padding, maxpool_after) for the six conv/ReLU/BN layers.
_LAYERS = ((8, 1, False), (8, 1, True),     # conv1
           (8, 1, False), (16, 1, True),    # conv2
           (16, 0, False), (16, 0, True))   # conv3


@jax.jit
def mnist_medium_forward(x_nchw, params):
    """MNISTMedium forward.  x_nchw: (N, 1, H, W) -> (N, 10) log-probabilities."""
    # Single (tiny) transpose into the channels-major internal layout.
    x = jnp.transpose(x_nchw, (1, 0, 2, 3)).astype(jnp.float32)    # (C, N, H, W)
    for i, (_, padding, pool) in enumerate(_LAYERS):
        x = conv_relu_bn(x, params["conv_w"][i], params["bn_g"][i],
                         params["bn_b"][i], padding=padding)
        # Dropout(0.1): identity (see TODO at top of file).
        if pool:
            x = max_pool_2x2(x)
    return gap_linear_logsoftmax(x, params["head_w"])


# ---------------------------------------------------------------------------
# Pure-JAX reference (independent path: lax.conv / reduce_window / log_softmax)
# ---------------------------------------------------------------------------
def _reference_forward(x_nchw, params):
    def conv_bn(x, w, g, b, padding):
        y = jax.lax.conv_general_dilated(
            x, w, window_strides=(1, 1),
            padding=((padding, padding), (padding, padding)),
            dimension_numbers=("NCHW", "OIHW", "NCHW"),
            precision=jax.lax.Precision.HIGHEST,
            preferred_element_type=jnp.float32)
        y = jnp.maximum(y, 0.0)
        mean = jnp.mean(y, axis=(0, 2, 3), keepdims=True)
        var = jnp.mean((y - mean) ** 2, axis=(0, 2, 3), keepdims=True)
        y = (y - mean) * jax.lax.rsqrt(var + BN_EPS)
        return y * g.reshape(1, -1, 1, 1) + b.reshape(1, -1, 1, 1)

    def pool(x):
        return jax.lax.reduce_window(x, -jnp.inf, jax.lax.max,
                                     (1, 1, 2, 2), (1, 1, 2, 2), "VALID")

    x = x_nchw.astype(jnp.float32)
    for i, (_, padding, do_pool) in enumerate(_LAYERS):
        x = conv_bn(x, params["conv_w"][i], params["bn_g"][i],
                    params["bn_b"][i], padding)
        if do_pool:
            x = pool(x)
    feat = jnp.mean(x, axis=(2, 3))                                  # (N, 16)
    logits = jnp.matmul(feat, params["head_w"].reshape(10, 16).T,
                        precision=jax.lax.Precision.HIGHEST)         # (N, 10)
    return jax.nn.log_softmax(logits, axis=1)


if __name__ == "__main__":
    # MNIST geometry expected by the module: (N, 1, 28, 28); small batch.
    N, H, W = 2, 28, 28
    key = jax.random.PRNGKey(0)

    params = {"conv_w": [], "bn_g": [], "bn_b": []}
    cin = 1
    for cout, _, _ in _LAYERS:
        key, kw_, kg, kb = jax.random.split(key, 4)
        params["conv_w"].append(
            0.2 * jax.random.normal(kw_, (cout, cin, 3, 3), dtype=jnp.float32))
        # Non-default affine params so the gamma/beta path is exercised.
        params["bn_g"].append(
            1.0 + 0.1 * jax.random.normal(kg, (cout,), dtype=jnp.float32))
        params["bn_b"].append(
            0.1 * jax.random.normal(kb, (cout,), dtype=jnp.float32))
        cin = cout
    key, kh, kx = jax.random.split(key, 3)
    params["head_w"] = 0.2 * jax.random.normal(kh, (10, 16, 1, 1),
                                               dtype=jnp.float32)
    x = jax.random.normal(kx, (N, 1, H, W), dtype=jnp.float32)

    out = jax.block_until_ready(mnist_medium_forward(x, params))
    assert out.shape == (N, 10), out.shape
    # log-probabilities must normalize
    assert bool(jnp.allclose(jnp.exp(out).sum(axis=1), 1.0, atol=1e-4))

    # The Pallas matmuls run at the MXU's default (reduced-precision-pass)
    # f32 precision, so compare against a HIGHEST-precision XLA reference with
    # a tolerance that covers 6 layers of that rounding.
    ref = _reference_forward(x, params)
    max_err = float(jnp.max(jnp.abs(out - ref)))
    assert max_err < 1e-1, max_err

    print("KERNEL_OK")
</pallas_src>

<mosaic_0001>
module attributes {stable_mosaic.version = 11 : i64} {
  func.func @_conv_relu_bn_kernel(%arg0: memref<9x1568xf32, #tpu.memory_space<vmem>>, %arg1: memref<8x9xf32, #tpu.memory_space<vmem>>, %arg2: memref<8x2xf32, #tpu.memory_space<vmem>>, %arg3: memref<8x1568xf32, #tpu.memory_space<vmem>>) attributes {dimension_semantics = [], scalar_prefetch = 0 : i64, scratch_operands = 0 : i64, tpu.core_type = #tpu.core_type<tc>} {
    %c0 = arith.constant 0 : index
    %c0_0 = arith.constant 0 : index
    %0 = vector.load %arg1[%c0, %c0_0] : memref<8x9xf32, #tpu.memory_space<vmem>>, vector<8x9xf32>
    %c0_1 = arith.constant 0 : index
    %c0_2 = arith.constant 0 : index
    %1 = vector.load %arg0[%c0_1, %c0_2] : memref<9x1568xf32, #tpu.memory_space<vmem>>, vector<9x1568xf32>
    %cst = arith.constant dense<0.000000e+00> : vector<8x1568xf32>
    %2 = tpu.matmul %0, %1, %cst {dimension_numbers = #tpu.dot_dimension_numbers<[1], [0], [0], [1], [0, 0, 1, 1], [], []>} : vector<8x9xf32>, vector<9x1568xf32>, vector<8x1568xf32> -> vector<8x1568xf32>
    %cst_3 = arith.constant 0.000000e+00 : f32
    %3 = vector.broadcast %cst_3 : f32 to vector<8x1568xf32>
    %4 = arith.maximumf %2, %3 : vector<8x1568xf32>
    %cst_4 = arith.constant dense<0.000000e+00> : vector<8xf32>
    %5 = vector.multi_reduction <add>, %4, %cst_4 [1] : vector<8x1568xf32> to vector<8xf32>
    %6 = vector.shape_cast %5 : vector<8xf32> to vector<8x1xf32>
    %7 = arith.mulf %4, %4 : vector<8x1568xf32>
    %cst_5 = arith.constant dense<0.000000e+00> : vector<8xf32>
    %8 = vector.multi_reduction <add>, %7, %cst_5 [1] : vector<8x1568xf32> to vector<8xf32>
    %9 = vector.shape_cast %8 : vector<8xf32> to vector<8x1xf32>
    %cst_6 = arith.constant 6.37755089E-4 : f32
    %10 = vector.broadcast %cst_6 : f32 to vector<8x1xf32>
    %11 = arith.mulf %6, %10 : vector<8x1xf32>
    %cst_7 = arith.constant 6.37755089E-4 : f32
    %12 = vector.broadcast %cst_7 : f32 to vector<8x1xf32>
    %13 = arith.mulf %9, %12 : vector<8x1xf32>
    %14 = arith.mulf %11, %11 : vector<8x1xf32>
    %15 = arith.subf %13, %14 : vector<8x1xf32>
    %cst_8 = arith.constant 9.99999974E-6 : f32
    %16 = vector.broadcast %cst_8 : f32 to vector<8x1xf32>
    %17 = arith.addf %15, %16 : vector<8x1xf32>
    %18 = math.rsqrt %17 : vector<8x1xf32>
    %c0_9 = arith.constant 0 : index
    %c0_10 = arith.constant 0 : index
    %19 = vector.load %arg2[%c0_9, %c0_10] : memref<8x2xf32, #tpu.memory_space<vmem>>, vector<8x1xf32>
    %c0_11 = arith.constant 0 : index
    %c1 = arith.constant 1 : index
    %20 = vector.load %arg2[%c0_11, %c1] : memref<8x2xf32, #tpu.memory_space<vmem>>, vector<8x1xf32>
    %21 = vector.broadcast %11 : vector<8x1xf32> to vector<8x1568xf32>
    %22 = arith.subf %4, %21 : vector<8x1568xf32>
    %23 = arith.mulf %18, %19 : vector<8x1xf32>
    %24 = vector.broadcast %23 : vector<8x1xf32> to vector<8x1568xf32>
    %25 = arith.mulf %22, %24 : vector<8x1568xf32>
    %26 = vector.broadcast %20 : vector<8x1xf32> to vector<8x1568xf32>
    %27 = arith.addf %25, %26 : vector<8x1568xf32>
    %c0_12 = arith.constant 0 : index
    %c0_13 = arith.constant 0 : index
    %28 = vector.load %arg3[%c0_12, %c0_13] : memref<8x1568xf32, #tpu.memory_space<vmem>>, vector<8x1568xf32>
    tpu.vector_store %arg3[%c0_12, %c0_13], %27 {strides = array<i32>} : memref<8x1568xf32, #tpu.memory_space<vmem>>, vector<8x1568xf32>,
    return
  }
}

module attributes {stable_mosaic.version = 11 : i64} {
  func.func @_conv_relu_bn_kernel(%arg0: memref<72x1568xf32, #tpu.memory_space<vmem>>, %arg1: memref<8x72xf32, #tpu.memory_space<vmem>>, %arg2: memref<8x2xf32, #tpu.memory_space<vmem>>, %arg3: memref<8x1568xf32, #tpu.memory_space<vmem>>) attributes {dimension_semantics = [], scalar_prefetch = 0 : i64, scratch_operands = 0 : i64, tpu.core_type = #tpu.core_type<tc>} {
    %c0 = arith.constant 0 : index
    %c0_0 = arith.constant 0 : index
    %0 = vector.load %arg1[%c0, %c0_0] : memref<8x72xf32, #tpu.memory_space<vmem>>, vector<8x72xf32>
    %c0_1 = arith.constant 0 : index
    %c0_2 = arith.constant 0 : index
    %1 = vector.load %arg0[%c0_1, %c0_2] : memref<72x1568xf32, #tpu.memory_space<vmem>>, vector<72x1568xf32>
    %cst = arith.constant dense<0.000000e+00> : vector<8x1568xf32>
    %2 = tpu.matmul %0, %1, %cst {dimension_numbers = #tpu.dot_dimension_numbers<[1], [0], [0], [1], [0, 0, 1, 1], [], []>} : vector<8x72xf32>, vector<72x1568xf32>, vector<8x1568xf32> -> vector<8x1568xf32>
    %cst_3 = arith.constant 0.000000e+00 : f32
    %3 = vector.broadcast %cst_3 : f32 to vector<8x1568xf32>
    %4 = arith.maximumf %2, %3 : vector<8x1568xf32>
    %cst_4 = arith.constant dense<0.000000e+00> : vector<8xf32>
    %5 = vector.multi_reduction <add>, %4, %cst_4 [1] : vector<8x1568xf32> to vector<8xf32>
    %6 = vector.shape_cast %5 : vector<8xf32> to vector<8x1xf32>
    %7 = arith.mulf %4, %4 : vector<8x1568xf32>
    %cst_5 = arith.constant dense<0.000000e+00> : vector<8xf32>
    %8 = vector.multi_reduction <add>, %7, %cst_5 [1] : vector<8x1568xf32> to vector<8xf32>
    %9 = vector.shape_cast %8 : vector<8xf32> to vector<8x1xf32>
    %cst_6 = arith.constant 6.37755089E-4 : f32
    %10 = vector.broadcast %cst_6 : f32 to vector<8x1xf32>
    %11 = arith.mulf %6, %10 : vector<8x1xf32>
    %cst_7 = arith.constant 6.37755089E-4 : f32
    %12 = vector.broadcast %cst_7 : f32 to vector<8x1xf32>
    %13 = arith.mulf %9, %12 : vector<8x1xf32>
    %14 = arith.mulf %11, %11 : vector<8x1xf32>
    %15 = arith.subf %13, %14 : vector<8x1xf32>
    %cst_8 = arith.constant 9.99999974E-6 : f32
    %16 = vector.broadcast %cst_8 : f32 to vector<8x1xf32>
    %17 = arith.addf %15, %16 : vector<8x1xf32>
    %18 = math.rsqrt %17 : vector<8x1xf32>
    %c0_9 = arith.constant 0 : index
    %c0_10 = arith.constant 0 : index
    %19 = vector.load %arg2[%c0_9, %c0_10] : memref<8x2xf32, #tpu.memory_space<vmem>>, vector<8x1xf32>
    %c0_11 = arith.constant 0 : index
    %c1 = arith.constant 1 : index
    %20 = vector.load %arg2[%c0_11, %c1] : memref<8x2xf32, #tpu.memory_space<vmem>>, vector<8x1xf32>
    %21 = vector.broadcast %11 : vector<8x1xf32> to vector<8x1568xf32>
    %22 = arith.subf %4, %21 : vector<8x1568xf32>
    %23 = arith.mulf %18, %19 : vector<8x1xf32>
    %24 = vector.broadcast %23 : vector<8x1xf32> to vector<8x1568xf32>
    %25 = arith.mulf %22, %24 : vector<8x1568xf32>
    %26 = vector.broadcast %20 : vector<8x1xf32> to vector<8x1568xf32>
    %27 = arith.addf %25, %26 : vector<8x1568xf32>
    %c0_12 = arith.constant 0 : index
    %c0_13 = arith.constant 0 : index
    %28 = vector.load %arg3[%c0_12, %c0_13] : memref<8x1568xf32, #tpu.memory_space<vmem>>, vector<8x1568xf32>
    tpu.vector_store %arg3[%c0_12, %c0_13], %27 {strides = array<i32>} : memref<8x1568xf32, #tpu.memory_space<vmem>>, vector<8x1568xf32>,
    return
  }
}

module attributes {stable_mosaic.version = 11 : i64} {
  func.func @_conv_relu_bn_kernel(%arg0: memref<72x392xf32, #tpu.memory_space<vmem>>, %arg1: memref<8x72xf32, #tpu.memory_space<vmem>>, %arg2: memref<8x2xf32, #tpu.memory_space<vmem>>, %arg3: memref<8x392xf32, #tpu.memory_space<vmem>>) attributes {dimension_semantics = [], scalar_prefetch = 0 : i64, scratch_operands = 0 : i64, tpu.core_type = #tpu.core_type<tc>} {
    %c0 = arith.constant 0 : index
    %c0_0 = arith.constant 0 : index
    %0 = vector.load %arg1[%c0, %c0_0] : memref<8x72xf32, #tpu.memory_space<vmem>>, vector<8x72xf32>
    %c0_1 = arith.constant 0 : index
    %c0_2 = arith.constant 0 : index
    %1 = vector.load %arg0[%c0_1, %c0_2] : memref<72x392xf32, #tpu.memory_space<vmem>>, vector<72x392xf32>
    %cst = arith.constant dense<0.000000e+00> : vector<8x392xf32>
    %2 = tpu.matmul %0, %1, %cst {dimension_numbers = #tpu.dot_dimension_numbers<[1], [0], [0], [1], [0, 0, 1, 1], [], []>} : vector<8x72xf32>, vector<72x392xf32>, vector<8x392xf32> -> vector<8x392xf32>
    %cst_3 = arith.constant 0.000000e+00 : f32
    %3 = vector.broadcast %cst_3 : f32 to vector<8x392xf32>
    %4 = arith.maximumf %2, %3 : vector<8x392xf32>
    %cst_4 = arith.constant dense<0.000000e+00> : vector<8xf32>
    %5 = vector.multi_reduction <add>, %4, %cst_4 [1] : vector<8x392xf32> to vector<8xf32>
    %6 = vector.shape_cast %5 : vector<8xf32> to vector<8x1xf32>
    %7 = arith.mulf %4, %4 : vector<8x392xf32>
    %cst_5 = arith.constant dense<0.000000e+00> : vector<8xf32>
    %8 = vector.multi_reduction <add>, %7, %cst_5 [1] : vector<8x392xf32> to vector<8xf32>
    %9 = vector.shape_cast %8 : vector<8xf32> to vector<8x1xf32>
    %cst_6 = arith.constant 0.00255102036 : f32
    %10 = vector.broadcast %cst_6 : f32 to vector<8x1xf32>
    %11 = arith.mulf %6, %10 : vector<8x1xf32>
    %cst_7 = arith.constant 0.00255102036 : f32
    %12 = vector.broadcast %cst_7 : f32 to vector<8x1xf32>
    %13 = arith.mulf %9, %12 : vector<8x1xf32>
    %14 = arith.mulf %11, %11 : vector<8x1xf32>
    %15 = arith.subf %13, %14 : vector<8x1xf32>
    %cst_8 = arith.constant 9.99999974E-6 : f32
    %16 = vector.broadcast %cst_8 : f32 to vector<8x1xf32>
    %17 = arith.addf %15, %16 : vector<8x1xf32>
    %18 = math.rsqrt %17 : vector<8x1xf32>
    %c0_9 = arith.constant 0 : index
    %c0_10 = arith.constant 0 : index
    %19 = vector.load %arg2[%c0_9, %c0_10] : memref<8x2xf32, #tpu.memory_space<vmem>>, vector<8x1xf32>
    %c0_11 = arith.constant 0 : index
    %c1 = arith.constant 1 : index
    %20 = vector.load %arg2[%c0_11, %c1] : memref<8x2xf32, #tpu.memory_space<vmem>>, vector<8x1xf32>
    %21 = vector.broadcast %11 : vector<8x1xf32> to vector<8x392xf32>
    %22 = arith.subf %4, %21 : vector<8x392xf32>
    %23 = arith.mulf %18, %19 : vector<8x1xf32>
    %24 = vector.broadcast %23 : vector<8x1xf32> to vector<8x392xf32>
    %25 = arith.mulf %22, %24 : vector<8x392xf32>
    %26 = vector.broadcast %20 : vector<8x1xf32> to vector<8x392xf32>
    %27 = arith.addf %25, %26 : vector<8x392xf32>
    %c0_12 = arith.constant 0 : index
    %c0_13 = arith.constant 0 : index
    %28 = vector.load %arg3[%c0_12, %c0_13] : memref<8x392xf32, #tpu.memory_space<vmem>>, vector<8x392xf32>
    tpu.vector_store %arg3[%c0_12, %c0_13], %27 {strides = array<i32>} : memref<8x392xf32, #tpu.memory_space<vmem>>, vector<8x392xf32>,
    return
  }
}

module attributes {stable_mosaic.version = 11 : i64} {
  func.func @_conv_relu_bn_kernel(%arg0: memref<72x392xf32, #tpu.memory_space<vmem>>, %arg1: memref<16x72xf32, #tpu.memory_space<vmem>>, %arg2: memref<16x2xf32, #tpu.memory_space<vmem>>, %arg3: memref<16x392xf32, #tpu.memory_space<vmem>>) attributes {dimension_semantics = [], scalar_prefetch = 0 : i64, scratch_operands = 0 : i64, tpu.core_type = #tpu.core_type<tc>} {
    %c0 = arith.constant 0 : index
    %c0_0 = arith.constant 0 : index
    %0 = vector.load %arg1[%c0, %c0_0] : memref<16x72xf32, #tpu.memory_space<vmem>>, vector<16x72xf32>
    %c0_1 = arith.constant 0 : index
    %c0_2 = arith.constant 0 : index
    %1 = vector.load %arg0[%c0_1, %c0_2] : memref<72x392xf32, #tpu.memory_space<vmem>>, vector<72x392xf32>
    %cst = arith.constant dense<0.000000e+00> : vector<16x392xf32>
    %2 = tpu.matmul %0, %1, %cst {dimension_numbers = #tpu.dot_dimension_numbers<[1], [0], [0], [1], [0, 0, 1, 1], [], []>} : vector<16x72xf32>, vector<72x392xf32>, vector<16x392xf32> -> vector<16x392xf32>
    %cst_3 = arith.constant 0.000000e+00 : f32
    %3 = vector.broadcast %cst_3 : f32 to vector<16x392xf32>
    %4 = arith.maximumf %2, %3 : vector<16x392xf32>
    %cst_4 = arith.constant dense<0.000000e+00> : vector<16xf32>
    %5 = vector.multi_reduction <add>, %4, %cst_4 [1] : vector<16x392xf32> to vector<16xf32>
    %6 = vector.shape_cast %5 : vector<16xf32> to vector<16x1xf32>
    %7 = arith.mulf %4, %4 : vector<16x392xf32>
    %cst_5 = arith.constant dense<0.000000e+00> : vector<16xf32>
    %8 = vector.multi_reduction <add>, %7, %cst_5 [1] : vector<16x392xf32> to vector<16xf32>
    %9 = vector.shape_cast %8 : vector<16xf32> to vector<16x1xf32>
    %cst_6 = arith.constant 0.00255102036 : f32
    %10 = vector.broadcast %cst_6 : f32 to vector<16x1xf32>
    %11 = arith.mulf %6, %10 : vector<16x1xf32>
    %cst_7 = arith.constant 0.00255102036 : f32
    %12 = vector.broadcast %cst_7 : f32 to vector<16x1xf32>
    %13 = arith.mulf %9, %12 : vector<16x1xf32>
    %14 = arith.mulf %11, %11 : vector<16x1xf32>
    %15 = arith.subf %13, %14 : vector<16x1xf32>
    %cst_8 = arith.constant 9.99999974E-6 : f32
    %16 = vector.broadcast %cst_8 : f32 to vector<16x1xf32>
    %17 = arith.addf %15, %16 : vector<16x1xf32>
    %18 = math.rsqrt %17 : vector<16x1xf32>
    %c0_9 = arith.constant 0 : index
    %c0_10 = arith.constant 0 : index
    %19 = vector.load %arg2[%c0_9, %c0_10] : memref<16x2xf32, #tpu.memory_space<vmem>>, vector<16x1xf32>
    %c0_11 = arith.constant 0 : index
    %c1 = arith.constant 1 : index
    %20 = vector.load %arg2[%c0_11, %c1] : memref<16x2xf32, #tpu.memory_space<vmem>>, vector<16x1xf32>
    %21 = vector.broadcast %11 : vector<16x1xf32> to vector<16x392xf32>
    %22 = arith.subf %4, %21 : vector<16x392xf32>
    %23 = arith.mulf %18, %19 : vector<16x1xf32>
    %24 = vector.broadcast %23 : vector<16x1xf32> to vector<16x392xf32>
    %25 = arith.mulf %22, %24 : vector<16x392xf32>
    %26 = vector.broadcast %20 : vector<16x1xf32> to vector<16x392xf32>
    %27 = arith.addf %25, %26 : vector<16x392xf32>
    %c0_12 = arith.constant 0 : index
    %c0_13 = arith.constant 0 : index
    %28 = vector.load %arg3[%c0_12, %c0_13] : memref<16x392xf32, #tpu.memory_space<vmem>>, vector<16x392xf32>
    tpu.vector_store %arg3[%c0_12, %c0_13], %27 {strides = array<i32>} : memref<16x392xf32, #tpu.memory_space<vmem>>, vector<16x392xf32>,
    return
  }
}

module attributes {stable_mosaic.version = 11 : i64} {
  func.func @_conv_relu_bn_kernel(%arg0: memref<144x50xf32, #tpu.memory_space<vmem>>, %arg1: memref<16x144xf32, #tpu.memory_space<vmem>>, %arg2: memref<16x2xf32, #tpu.memory_space<vmem>>, %arg3: memref<16x50xf32, #tpu.memory_space<vmem>>) attributes {dimension_semantics = [], scalar_prefetch = 0 : i64, scratch_operands = 0 : i64, tpu.core_type = #tpu.core_type<tc>} {
    %c0 = arith.constant 0 : index
    %c0_0 = arith.constant 0 : index
    %0 = vector.load %arg1[%c0, %c0_0] : memref<16x144xf32, #tpu.memory_space<vmem>>, vector<16x144xf32>
    %c0_1 = arith.constant 0 : index
    %c0_2 = arith.constant 0 : index
    %1 = vector.load %arg0[%c0_1, %c0_2] : memref<144x50xf32, #tpu.memory_space<vmem>>, vector<144x50xf32>
    %cst = arith.constant dense<0.000000e+00> : vector<16x50xf32>
    %2 = tpu.matmul %0, %1, %cst {dimension_numbers = #tpu.dot_dimension_numbers<[1], [0], [0], [1], [0, 0, 1, 1], [], []>} : vector<16x144xf32>, vector<144x50xf32>, vector<16x50xf32> -> vector<16x50xf32>
    %cst_3 = arith.constant 0.000000e+00 : f32
    %3 = vector.broadcast %cst_3 : f32 to vector<16x50xf32>
    %4 = arith.maximumf %2, %3 : vector<16x50xf32>
    %cst_4 = arith.constant dense<0.000000e+00> : vector<16xf32>
    %5 = vector.multi_reduction <add>, %4, %cst_4 [1] : vector<16x50xf32> to vector<16xf32>
    %6 = vector.shape_cast %5 : vector<16xf32> to vector<16x1xf32>
    %7 = arith.mulf %4, %4 : vector<16x50xf32>
    %cst_5 = arith.constant dense<0.000000e+00> : vector<16xf32>
    %8 = vector.multi_reduction <add>, %7, %cst_5 [1] : vector<16x50xf32> to vector<16xf32>
    %9 = vector.shape_cast %8 : vector<16xf32> to vector<16x1xf32>
    %cst_6 = arith.constant 2.000000e-02 : f32
    %10 = vector.broadcast %cst_6 : f32 to vector<16x1xf32>
    %11 = arith.mulf %6, %10 : vector<16x1xf32>
    %cst_7 = arith.constant 2.000000e-02 : f32
    %12 = vector.broadcast %cst_7 : f32 to vector<16x1xf32>
    %13 = arith.mulf %9, %12 : vector<16x1xf32>
    %14 = arith.mulf %11, %11 : vector<16x1xf32>
    %15 = arith.subf %13, %14 : vector<16x1xf32>
    %cst_8 = arith.constant 9.99999974E-6 : f32
    %16 = vector.broadcast %cst_8 : f32 to vector<16x1xf32>
    %17 = arith.addf %15, %16 : vector<16x1xf32>
    %18 = math.rsqrt %17 : vector<16x1xf32>
    %c0_9 = arith.constant 0 : index
    %c0_10 = arith.constant 0 : index
    %19 = vector.load %arg2[%c0_9, %c0_10] : memref<16x2xf32, #tpu.memory_space<vmem>>, vector<16x1xf32>
    %c0_11 = arith.constant 0 : index
    %c1 = arith.constant 1 : index
    %20 = vector.load %arg2[%c0_11, %c1] : memref<16x2xf32, #tpu.memory_space<vmem>>, vector<16x1xf32>
    %21 = vector.broadcast %11 : vector<16x1xf32> to vector<16x50xf32>
    %22 = arith.subf %4, %21 : vector<16x50xf32>
    %23 = arith.mulf %18, %19 : vector<16x1xf32>
    %24 = vector.broadcast %23 : vector<16x1xf32> to vector<16x50xf32>
    %25 = arith.mulf %22, %24 : vector<16x50xf32>
    %26 = vector.broadcast %20 : vector<16x1xf32> to vector<16x50xf32>
    %27 = arith.addf %25, %26 : vector<16x50xf32>
    %c0_12 = arith.constant 0 : index
    %c0_13 = arith.constant 0 : index
    %28 = vector.load %arg3[%c0_12, %c0_13] : memref<16x50xf32, #tpu.memory_space<vmem>>, vector<16x50xf32>
    tpu.vector_store %arg3[%c0_12, %c0_13], %27 {strides = array<i32>} : memref<16x50xf32, #tpu.memory_space<vmem>>, vector<16x50xf32>,
    return
  }
}

module attributes {stable_mosaic.version = 11 : i64} {
  func.func @_conv_relu_bn_kernel(%arg0: memref<144x18xf32, #tpu.memory_space<vmem>>, %arg1: memref<16x144xf32, #tpu.memory_space<vmem>>, %arg2: memref<16x2xf32, #tpu.memory_space<vmem>>, %arg3: memref<16x18xf32, #tpu.memory_space<vmem>>) attributes {dimension_semantics = [], scalar_prefetch = 0 : i64, scratch_operands = 0 : i64, tpu.core_type = #tpu.core_type<tc>} {
    %c0 = arith.constant 0 : index
    %c0_0 = arith.constant 0 : index
    %0 = vector.load %arg1[%c0, %c0_0] : memref<16x144xf32, #tpu.memory_space<vmem>>, vector<16x144xf32>
    %c0_1 = arith.constant 0 : index
    %c0_2 = arith.constant 0 : index
    %1 = vector.load %arg0[%c0_1, %c0_2] : memref<144x18xf32, #tpu.memory_space<vmem>>, vector<144x18xf32>
    %cst = arith.constant dense<0.000000e+00> : vector<16x18xf32>
    %2 = tpu.matmul %0, %1, %cst {dimension_numbers = #tpu.dot_dimension_numbers<[1], [0], [0], [1], [0, 0, 1, 1], [], []>} : vector<16x144xf32>, vector<144x18xf32>, vector<16x18xf32> -> vector<16x18xf32>
    %cst_3 = arith.constant 0.000000e+00 : f32
    %3 = vector.broadcast %cst_3 : f32 to vector<16x18xf32>
    %4 = arith.maximumf %2, %3 : vector<16x18xf32>
    %cst_4 = arith.constant dense<0.000000e+00> : vector<16xf32>
    %5 = vector.multi_reduction <add>, %4, %cst_4 [1] : vector<16x18xf32> to vector<16xf32>
    %6 = vector.shape_cast %5 : vector<16xf32> to vector<16x1xf32>
    %7 = arith.mulf %4, %4 : vector<16x18xf32>
    %cst_5 = arith.constant dense<0.000000e+00> : vector<16xf32>
    %8 = vector.multi_reduction <add>, %7, %cst_5 [1] : vector<16x18xf32> to vector<16xf32>
    %9 = vector.shape_cast %8 : vector<16xf32> to vector<16x1xf32>
    %cst_6 = arith.constant 0.055555556 : f32
    %10 = vector.broadcast %cst_6 : f32 to vector<16x1xf32>
    %11 = arith.mulf %6, %10 : vector<16x1xf32>
    %cst_7 = arith.constant 0.055555556 : f32
    %12 = vector.broadcast %cst_7 : f32 to vector<16x1xf32>
    %13 = arith.mulf %9, %12 : vector<16x1xf32>
    %14 = arith.mulf %11, %11 : vector<16x1xf32>
    %15 = arith.subf %13, %14 : vector<16x1xf32>
    %cst_8 = arith.constant 9.99999974E-6 : f32
    %16 = vector.broadcast %cst_8 : f32 to vector<16x1xf32>
    %17 = arith.addf %15, %16 : vector<16x1xf32>
    %18 = math.rsqrt %17 : vector<16x1xf32>
    %c0_9 = arith.constant 0 : index
    %c0_10 = arith.constant 0 : index
    %19 = vector.load %arg2[%c0_9, %c0_10] : memref<16x2xf32, #tpu.memory_space<vmem>>, vector<16x1xf32>
    %c0_11 = arith.constant 0 : index
    %c1 = arith.constant 1 : index
    %20 = vector.load %arg2[%c0_11, %c1] : memref<16x2xf32, #tpu.memory_space<vmem>>, vector<16x1xf32>
    %21 = vector.broadcast %11 : vector<16x1xf32> to vector<16x18xf32>
    %22 = arith.subf %4, %21 : vector<16x18xf32>
    %23 = arith.mulf %18, %19 : vector<16x1xf32>
    %24 = vector.broadcast %23 : vector<16x1xf32> to vector<16x18xf32>
    %25 = arith.mulf %22, %24 : vector<16x18xf32>
    %26 = vector.broadcast %20 : vector<16x1xf32> to vector<16x18xf32>
    %27 = arith.addf %25, %26 : vector<16x18xf32>
    %c0_12 = arith.constant 0 : index
    %c0_13 = arith.constant 0 : index
    %28 = vector.load %arg3[%c0_12, %c0_13] : memref<16x18xf32, #tpu.memory_space<vmem>>, vector<16x18xf32>
    tpu.vector_store %arg3[%c0_12, %c0_13], %27 {strides = array<i32>} : memref<16x18xf32, #tpu.memory_space<vmem>>, vector<16x18xf32>,
    return
  }
}

module attributes {stable_mosaic.version = 11 : i64} {
  func.func @_head_kernel(%arg0: memref<16x2xf32, #tpu.memory_space<vmem>>, %arg1: memref<10x16xf32, #tpu.memory_space<vmem>>, %arg2: memref<10x2xf32, #tpu.memory_space<vmem>>) attributes {dimension_semantics = [], scalar_prefetch = 0 : i64, scratch_operands = 0 : i64, tpu.core_type = #tpu.core_type<tc>} {
    %c0 = arith.constant 0 : index
    %c0_0 = arith.constant 0 : index
    %0 = vector.load %arg1[%c0, %c0_0] : memref<10x16xf32, #tpu.memory_space<vmem>>, vector<10x16xf32>
    %c0_1 = arith.constant 0 : index
    %c0_2 = arith.constant 0 : index
    %1 = vector.load %arg0[%c0_1, %c0_2] : memref<16x2xf32, #tpu.memory_space<vmem>>, vector<16x2xf32>
    %cst = arith.constant dense<0.000000e+00> : vector<10x2xf32>
    %2 = tpu.matmul %0, %1, %cst {dimension_numbers = #tpu.dot_dimension_numbers<[1], [0], [0], [1], [0, 0, 1, 1], [], []>} : vector<10x16xf32>, vector<16x2xf32>, vector<10x2xf32> -> vector<10x2xf32>
    %cst_3 = arith.constant dense<0xFF800000> : vector<2xf32>
    %3 = vector.multi_reduction <maximumf>, %2, %cst_3 [0] : vector<10x2xf32> to vector<2xf32>
    %4 = vector.shape_cast %3 : vector<2xf32> to vector<1x2xf32>
    %5 = vector.broadcast %4 : vector<1x2xf32> to vector<10x2xf32>
    %6 = arith.subf %2, %5 : vector<10x2xf32>
    %7 = math.exp %6 : vector<10x2xf32>
    %cst_4 = arith.constant dense<0.000000e+00> : vector<2xf32>
    %8 = vector.multi_reduction <add>, %7, %cst_4 [0] : vector<10x2xf32> to vector<2xf32>
    %9 = vector.shape_cast %8 : vector<2xf32> to vector<1x2xf32>
    %10 = math.log %9 : vector<1x2xf32>
    %11 = arith.addf %10, %4 : vector<1x2xf32>
    %12 = vector.broadcast %11 : vector<1x2xf32> to vector<10x2xf32>
    %13 = arith.subf %2, %12 : vector<10x2xf32>
    %c0_5 = arith.constant 0 : index
    %c0_6 = arith.constant 0 : index
    %14 = vector.load %arg2[%c0_5, %c0_6] : memref<10x2xf32, #tpu.memory_space<vmem>>, vector<10x2xf32>
    tpu.vector_store %arg2[%c0_5, %c0_6], %13 {strides = array<i32>} : memref<10x2xf32, #tpu.memory_space<vmem>>, vector<10x2xf32>,
    return
  }
}

</mosaic_0001>

<bundles_post_ra>
// kernel: mnist_medium_forward.7
= control target key start
LH: loop header
LB: loop body
LE: loop exit
PB: predicated region body
PF: predicated region fallthrough
CT: control target
= control target key end

     0   :  { %vm45_vm0 = vcmask 1040384   ;;  %vm793_vm1 = vmmov 1   ;;  %v794_v3 = vmov 0.0   ;;  %vm41_vm3 = vcmask 72704   ;;  %s1061_s0 = inlined_call_operand.vmem [shape: f32[9,1568], index: 0, kind: input, shape index: {}]   ;;  %s1062_s1 = inlined_call_operand.vmem [shape: f32[8,9], index: 1, kind: input, shape index: {}]   ;;  %s1063_s2 = inlined_call_operand.vmem [shape: f32[8,2], index: 2, kind: input, shape index: {}]   ;;  %s1064_s3 = inlined_call_operand.vmem [shape: f32[8,1568], index: 3, kind: output, shape index: {}]  }
   0x1   :  { %v16_v0 = vld [vmem:[%s1061_s0 + $0x8] sm:$0xff]  ;;  %v29_v1 = vld [vmem:[%s1061_s0 + $0x70] sm:$0x1]  ;;  %vm825_vm2 = vmpackc.low %vm45_vm0, %vm793_vm1  ;;  %149 = vmatprep.mubr.f32.mxu0 %v794_v3  ;;  %220 = vmatprep.mubr.f32.mxu1 %v794_v3  ;;  %v795_v42 = vmov 0.0|0.0   ;;  %vm796_vm4 = vmmov 0   ;;  %vm605_vm5 = vcmask 261120  }
   0x2   :  { %v742_v4 = vpack.c.bf16 %v29_v1, %v16_v0  ;;  %v15_v5 = vld [vmem:[%s1061_s0] sm:$0xff]  ;;  %v28_v6 = vld [vmem:[%s1061_s0 + $0x68] sm:$0x1]  ;;  %v18_v7 = vld [vmem:[%s1061_s0 + $0x18] sm:$0xff] }
   0x3   :  { %v745_v8 = vpack.c.bf16 %v28_v6, %v15_v5  ;;  %v31_v9 = vld [vmem:[%s1061_s0 + $0x80] sm:$0x1]  ;;  %v17_v10 = vld [vmem:[%s1061_s0 + $0x10] sm:$0xff]  ;;  %v30_v11 = vld [vmem:[%s1061_s0 + $0x78] sm:$0x1] }
   0x4   :  { %744 = vmatprep.subr.msk.bf16.mxu0 %vm825_vm2, %v742_v4  ;;  %v748_v12 = vpack.c.bf16 %v31_v9, %v18_v7  ;;  %v751_v13 = vpack.c.bf16 %v30_v11, %v17_v10  ;;  %v14_v14 = vld [vmem:[%s1062_s1] sm:$0xff]  ;;  %v20_v15 = vld [vmem:[%s1061_s0 + $0x28] sm:$0xff]  ;;  %v33_v16 = vld [vmem:[%s1061_s0 + $0x90] sm:$0x1] }
   0x5   :  { %747 = vmatpush1.bf16.msk.msra.mxu0 %vm825_vm2, %v745_v8  ;;  %v754_v17 = vpack.c.bf16 %v33_v16, %v20_v15  ;;  %v19_v18 = vld [vmem:[%s1061_s0 + $0x20] sm:$0xff]  ;;  %v32_v19 = vld [vmem:[%s1061_s0 + $0x88] sm:$0x1]  ;;  %v22_v20 = vld [vmem:[%s1061_s0 + $0x38] sm:$0xff] }
   0x6   :  { %750 = vmatprep.subr.msk.bf16.mxu1 %vm825_vm2, %v748_v12  ;;  %v757_v21 = vpack.c.bf16 %v32_v19, %v19_v18  ;;  %v35_v22 = vld [vmem:[%s1061_s0 + $0xa0] sm:$0x1]  ;;  %v21_v23 = vld [vmem:[%s1061_s0 + $0x30] sm:$0xff]  ;;  %v34_v24 = vld [vmem:[%s1061_s0 + $0x98] sm:$0x1] }
   0x7   :  { %753 = vmatpush1.bf16.msk.msra.mxu1 %vm825_vm2, %v751_v13  ;;  %756 = vmatprep.subr.msk.bf16.mxu0 %vm825_vm2, %v754_v17  ;;  %v760_v25 = vpack.c.bf16 %v35_v22, %v22_v20  ;;  %v763_v26 = vpack.c.bf16 %v34_v24, %v21_v23  ;;  %v24_v27 = vld [vmem:[%s1061_s0 + $0x48] sm:$0xff]  ;;  %v37_v28 = vld [vmem:[%s1061_s0 + $0xb0] sm:$0x1]  ;;  %v23_v29 = vld [vmem:[%s1061_s0 + $0x40] sm:$0xff] }
   0x8   :  { %714 = vmatmul.mubr.msk.f32.vlgmr.msra.gmra.mrb[0].mxu0 %vm41_vm3, %v14_v14  ;;  %v766_v30 = vpack.c.bf16 %v37_v28, %v24_v27  ;;  %v36_v31 = vld [vmem:[%s1061_s0 + $0xa8] sm:$0x1]  ;;  %v26_v32 = vld [vmem:[%s1061_s0 + $0x58] sm:$0xff]  ;;  %v39_v33 = vld [vmem:[%s1061_s0 + $0xc0] sm:$0x1] }
   0x9   :  { %759 = vmatpush1.bf16.msk.msra.mxu0 %vm825_vm2, %v757_v21  ;;  %291 = vmatprep.mubr.f32.mxu0 %v794_v3  ;;  %v769_v34 = vpack.c.bf16 %v36_v31, %v23_v29  ;;  %v25_v35 = vld [vmem:[%s1061_s0 + $0x50] sm:$0xff]  ;;  %v38_v36 = vld [vmem:[%s1061_s0 + $0xb8] sm:$0x1]  ;;  %v772_v37 = vpack.c.bf16 %v39_v33, %v26_v32  ;;  %v27_v38 = vld [vmem:[%s1061_s0 + $0x60] sm:$0xff] }
   0xa   :  { %717 = vmatmul.mubr.msk.f32.vlgmr.msra.gmra.mrb[0].mxu1 %vm41_vm3, %v14_v14  ;;  %762 = vmatprep.subr.msk.bf16.mxu1 %vm825_vm2, %v760_v25  ;;  %v40_v39 = vld [vmem:[%s1061_s0 + $0xc8] sm:$0x1]  ;;  %v775_v40 = vpack.c.bf16 %v38_v36, %v25_v35 }
   0xb   :  { %765 = vmatpush1.bf16.msk.msra.mxu1 %vm825_vm2, %v763_v26  ;;  %362 = vmatprep.mubr.f32.mxu1 %v794_v3  ;;  %v779_v41 = vpack.c.bf16 %v40_v39, %v27_v38 }
   0xc   :  { %720 = vmatmul.mubr.msk.f32.vlgmr.msra.gmra.mrb[2].mxu0 %vm41_vm3, %v14_v14  ;;  %768 = vmatprep.subr.msk.bf16.mxu0 %vm825_vm2, %v766_v30 }
   0xd   :  { %771 = vmatpush1.bf16.msk.msra.mxu0 %vm825_vm2, %v769_v34  ;;  %433 = vmatprep.mubr.f32.mxu0 %v794_v3 }
   0xe   :  { %723 = vmatmul.mubr.msk.f32.vlgmr.msra.gmra.mrb[2].mxu1 %vm41_vm3, %v14_v14  ;;  %774 = vmatprep.subr.msk.bf16.mxu1 %vm825_vm2, %v772_v37 }
   0xf   :  { %777 = vmatpush1.bf16.msk.msra.mxu1 %vm825_vm2, %v775_v40  ;;  %504 = vmatprep.mubr.f32.mxu1 %v794_v3 }
  0x10   :  { %726 = vmatmul.mubr.msk.f32.vlgmr.msra.gmra.mrb[4].mxu0 %vm41_vm3, %v14_v14  ;;  %778 = vmatprep.subr.bf16.mxu0 %v795_v42 }
  0x11   :  { %781 = vmatpush3.bf16.msk.msra.mxu0 %vm825_vm2, %v779_v41  ;;  %739 = vmatprep.mubr.msk.f32.mxu0 %vm796_vm4, %v794_v3 }
  0x12   :  { %729 = vmatmul.mubr.msk.f32.vlgmr.msra.gmra.mrb[4].mxu1 %vm41_vm3, %v14_v14 }
  0x14   :  { %740 = vmatmul.mubr.msk.f32.vlgmr.msra.gmra.mrb[6].mxu0 %vm41_vm3, %v14_v14 }
  0xdb   :  { %v151_v43 = vpop.f32.mrb[0].mxu0 }
  0xdc   :  { %v944_v44 = vmax.f32 %v151_v43, 0.0  ;;  %v153_v45 = vpop.f32.mrb[1].mxu0 }
  0xdd   :  { %v946_v46 = vmax.f32 %v153_v45, 0.0  ;;  %v222_v47 = vpop.f32.mrb[0].mxu1 }
  0xde   :  { %v610_v48 = vmul.f32 %v944_v44, %v944_v44  ;;  %v950_v49 = vmax.f32 %v222_v47, 0.0  ;;  %v224_v50 = vpop.f32.mrb[1].mxu1  ;;  %v797_v47 = vmov 0  }
  0xdf   :  { %v594_v51 = vadd.f32 %v946_v46, %v944_v44  ;;  %v611_v52 = vmul.f32 %v946_v46, %v946_v46  ;;  %v956_v53 = vmax.f32 %v224_v50, 0.0  ;;  %v293_v54 = vpop.f32.mrb[2].mxu0  ;;  %788 = vset.pattern.permute.xlu1 %v797_v47 }
  0xe0   :  { %v612_v55 = vmul.f32 %v950_v49, %v950_v49  ;;  %v960_v56 = vmax.f32 %v293_v54, 0.0  ;;  %v295_v57 = vpop.f32.mrb[3].mxu0 }
  0xe1   :  { %v623_v58 = vadd.f32 %v611_v52, %v610_v48  ;;  %v595_v59 = vadd.f32 %v594_v51, %v950_v49  ;;  %v364_v60 = vpop.f32.mrb[2].mxu1  ;;  %v613_v61 = vmul.f32 %v956_v53, %v956_v53  ;;  %v965_v62 = vmax.f32 %v295_v57, 0.0 }
  0xe2   :  { %v366_v63 = vpop.f32.mrb[3].mxu1  ;;  %v614_v2 = vmul.f32 %v960_v56, %v960_v56  ;;  %v970_v3 = vmax.f32 %v364_v60, 0.0  ;;  %v798_v48 = vmov 1  }
  0xe3   :  { %v624_v0 = vadd.f32 %v623_v58, %v612_v55  ;;  %v596_v1 = vadd.f32 %v595_v59, %v956_v53  ;;  %v435_v4 = vpop.f32.mrb[4].mxu0  ;;  %v615_v9 = vmul.f32 %v965_v62, %v965_v62  ;;  %v975_v10 = vmax.f32 %v366_v63, 0.0  ;;  %790 = vset.pattern.permute.xlu0 %v798_v48  ;;  %v644_v59 = vld [vmem:[%s1063_s2] sm:$0xff] }
  0xe4   :  { %v437_v5 = vpop.f32.mrb[5].mxu0  ;;  %v616_v14 = vmul.f32 %v970_v3, %v970_v3  ;;  %v980_v15 = vmax.f32 %v435_v4, 0.0 }
  0xe5   :  { %v625_v6 = vadd.f32 %v624_v0, %v613_v61  ;;  %v597_v7 = vadd.f32 %v596_v1, %v960_v56  ;;  %v506_v8 = vpop.f32.mrb[4].mxu1  ;;  %v617_v20 = vmul.f32 %v975_v10, %v975_v10  ;;  %v985_v21 = vmax.f32 %v437_v5, 0.0 }
  0xe6   :  { %v508_v11 = vpop.f32.mrb[5].mxu1  ;;  %v618_v24 = vmul.f32 %v980_v15, %v980_v15  ;;  %v990_v25 = vmax.f32 %v506_v8, 0.0 }
  0xe7   :  { %v626_v12 = vadd.f32 %v625_v6, %v614_v2  ;;  %v598_v13 = vadd.f32 %v597_v7, %v965_v62  ;;  %v577_v16 = vpop.f32.mrb[6].mxu0  ;;  %v619_v28 = vmul.f32 %v985_v21, %v985_v21  ;;  %v592_v33 = vmax.f32 %v508_v11, 0.0 }
  0xe8   :  { %v741_v17 = vpop.f32.mrb[7].mxu0  ;;  %v995_v29 = vmax.f32 %v577_v16, 0.0  ;;  %v620_v32 = vmul.f32 %v990_v25, %v990_v25 }
  0xe9   :  { %v627_v18 = vadd.f32 %v626_v12, %v615_v9  ;;  %v599_v19 = vadd.f32 %v598_v13, %v970_v3  ;;  %v621_v38 = vmul.f32 %v592_v33, %v592_v33 }
  0xea   :  { %v606_v36 = vsel %vm605_vm5, %v995_v29, 0.0  ;;  %v622_v37 = vmul.f32 %v995_v29, %v995_v29 }
  0xeb   :  { %v628_v22 = vadd.f32 %v627_v18, %v616_v14  ;;  %v600_v23 = vadd.f32 %v599_v19, %v975_v10 }
  0xec   :  { %v634_v43 = vsel %vm605_vm5, %v622_v37, 0.0 }
  0xed   :  { %v629_v26 = vadd.f32 %v628_v22, %v617_v20  ;;  %v601_v27 = vadd.f32 %v600_v23, %v980_v15 }
  0xef   :  { %v630_v30 = vadd.f32 %v629_v26, %v618_v24  ;;  %v602_v31 = vadd.f32 %v601_v27, %v985_v21 }
  0xf1   :  { %v631_v34 = vadd.f32 %v630_v30, %v619_v28  ;;  %v603_v35 = vadd.f32 %v602_v31, %v990_v25 }
  0xf3   :  { %v604_v39 = vadd.f32 %v603_v35, %v592_v33  ;;  %v632_v40 = vadd.f32 %v631_v34, %v620_v32 }
  0xf5   :  { %v607_v41 = vadd.f32 %v606_v36, %v604_v39  ;;  %v633_v42 = vadd.f32 %v632_v40, %v621_v38 }
  0xf7   :  { %608 = vadd.xlane.f32.xlu0 %v607_v41  ;;  %v635_v45 = vadd.f32 %v634_v43, %v633_v42 }
  0xfb   :  { %636 = vadd.xlane.f32.xlu0 %v635_v45 }
 0x184   :  { %v609_v50 = vpop.xlane.xlu0 %608 }
 0x185   :  { %v638_v51 = vmul.f32 0.0006377551, %v609_v50 }
 0x187   :  { %v640_v54 = vmul.f32 %v638_v51, %v638_v51  ;;  %v645_v63 = vsub.f32 %v944_v44, %v638_v51  ;;  %v646_v0 = vsub.f32 %v946_v46, %v638_v51  ;;  %v647_v2 = vsub.f32 %v950_v49, %v638_v51 }
 0x188   :  { %v637_v52 = vpop.xlane.xlu0 %636  ;;  %v648_v4 = vsub.f32 %v956_v53, %v638_v51  ;;  %v649_v5 = vsub.f32 %v960_v56, %v638_v51  ;;  %v650_v6 = vsub.f32 %v965_v62, %v638_v51  ;;  %v651_v7 = vsub.f32 %v970_v3, %v638_v51 }
 0x189   :  { %v639_v55 = vmul.f32 0.0006377551, %v637_v52  ;;  %v652_v8 = vsub.f32 %v975_v10, %v638_v51  ;;  %v653_v9 = vsub.f32 %v980_v15, %v638_v51  ;;  %v654_v11 = vsub.f32 %v985_v21, %v638_v51 }
 0x18a   :  { %v655_v44 = vsub.f32 %v990_v25, %v638_v51  ;;  %v656_v46 = vsub.f32 %v592_v33, %v638_v51  ;;  %v657_v12 = vsub.f32 %v995_v29, %v638_v51 }
 0x18b   :  { %v641_v57 = vsub.f32 %v639_v55, %v640_v54 }
 0x18d   :  { %v642_v58 = vadd.f32 1e-05, %v641_v57 }
 0x18f   :  { %791 = vrsqrt.f32 %v642_v58 }
 0x199   :  { %v792_v60 = vpop.eup %791 }
 0x19a   :  { %v658_v61 = vmul.f32 %v792_v60, %v644_v59 }
 0x19c   :  { %661 = vperm.xlu1 %788, %v658_v61  }
 0x1a0   :  { %789 = vset.pattern.permute.xlu1 %v798_v48 }
 0x1a1   :  { %679 = vperm.xlu1 %789, %v644_v59  }
 0x21b   :  { %v662_v1 = vpop.permute.xlu1 %661 }
 0x21c   :  { %v664_v49 = vmul.f32 %v662_v1, %v645_v63  ;;  %v665_v13 = vmul.f32 %v662_v1, %v646_v0  ;;  %v666_v53 = vmul.f32 %v662_v1, %v647_v2  ;;  %v667_v14 = vmul.f32 %v662_v1, %v648_v4 }
 0x21d   :  { %v668_v56 = vmul.f32 %v662_v1, %v649_v5  ;;  %v669_v16 = vmul.f32 %v662_v1, %v650_v6  ;;  %v670_v62 = vmul.f32 %v662_v1, %v651_v7  ;;  %v671_v17 = vmul.f32 %v662_v1, %v652_v8 }
 0x21e   :  { %v672_v3 = vmul.f32 %v662_v1, %v653_v9  ;;  %v673_v18 = vmul.f32 %v662_v1, %v654_v11  ;;  %v674_v10 = vmul.f32 %v662_v1, %v655_v44  ;;  %v675_v19 = vmul.f32 %v662_v1, %v656_v46 }
 0x21f   :  { %v676_v15 = vmul.f32 %v662_v1, %v657_v12 }
 0x220   :  { %v680_v20 = vpop.permute.xlu1 %679 }
 0x221   :  { %v682_v21 = vadd.f32 %v680_v20, %v664_v49  ;;  %v683_v22 = vadd.f32 %v680_v20, %v665_v13  ;;  %v684_v23 = vadd.f32 %v680_v20, %v666_v53  ;;  %v685_v24 = vadd.f32 %v680_v20, %v667_v14 }
 0x222   :  { %v686_v25 = vadd.f32 %v680_v20, %v668_v56  ;;  %v687_v26 = vadd.f32 %v680_v20, %v669_v16  ;;  %v688_v27 = vadd.f32 %v680_v20, %v670_v62  ;;  %v689_v28 = vadd.f32 %v680_v20, %v671_v17 }
 0x223   :  { %v690_v29 = vadd.f32 %v680_v20, %v672_v3  ;;  %v691_v30 = vadd.f32 %v680_v20, %v673_v18  ;;  %v692_v31 = vadd.f32 %v680_v20, %v674_v10  ;;  %v693_v32 = vadd.f32 %v680_v20, %v675_v19  ;;  %695 = vst [vmem:[%s1064_s3] sm:$0xff] %v682_v21 }
 0x224   :  { %696 = vst [vmem:[%s1064_s3 + $0x8] sm:$0xff] %v683_v22  ;;  %697 = vst [vmem:[%s1064_s3 + $0x10] sm:$0xff] %v684_v23  ;;  %v694_v33 = vadd.f32 %v680_v20, %v676_v15 }
 0x225   :  { %698 = vst [vmem:[%s1064_s3 + $0x18] sm:$0xff] %v685_v24  ;;  %699 = vst [vmem:[%s1064_s3 + $0x20] sm:$0xff] %v686_v25 }
 0x226   :  { %700 = vst [vmem:[%s1064_s3 + $0x28] sm:$0xff] %v687_v26  ;;  %701 = vst [vmem:[%s1064_s3 + $0x30] sm:$0xff] %v688_v27 }
 0x227   :  { %702 = vst [vmem:[%s1064_s3 + $0x38] sm:$0xff] %v689_v28  ;;  %703 = vst [vmem:[%s1064_s3 + $0x40] sm:$0xff] %v690_v29 }
 0x228   :  { %704 = vst [vmem:[%s1064_s3 + $0x48] sm:$0xff] %v691_v30  ;;  %705 = vst [vmem:[%s1064_s3 + $0x50] sm:$0xff] %v692_v31 }
 0x229   :  { %706 = vst [vmem:[%s1064_s3 + $0x58] sm:$0xff] %v693_v32  ;;  %707 = vst.msk [vmem:[%s1064_s3 + $0x60] sm:$0xff] %vm605_vm5, %v694_v33 }

// kernel: mnist_medium_forward.8
= control target key start
LH: loop header
LB: loop body
LE: loop exit
PB: predicated region body
PF: predicated region fallthrough
CT: control target
= control target key end

     0   :  { %v919_v3 = vmov 0.0   ;;  %vm132_vm0 = vcmask 588800   ;;  %vm921_vm1 = vmmov 0   ;;  %vm656_vm2 = vcmask 261120   ;;  %s1439_s0 = inlined_call_operand.vmem [shape: f32[72,1568], index: 0, kind: input, shape index: {}]   ;;  %s1440_s1 = inlined_call_operand.vmem [shape: f32[8,72], index: 1, kind: input, shape index: {}]   ;;  %s1441_s2 = inlined_call_operand.vmem [shape: f32[8,2], index: 2, kind: input, shape index: {}]   ;;  %s1442_s3 = inlined_call_operand.vmem [shape: f32[8,1568], index: 3, kind: output, shape index: {}]  }
   0x1   :  { %v16_v0 = vld [vmem:[%s1439_s0 + $0x8] sm:$0xff]  ;;  %v29_v1 = vld [vmem:[%s1439_s0 + $0x70] sm:$0xff]  ;;  %v15_v2 = vld [vmem:[%s1439_s0] sm:$0xff]  ;;  %200 = vmatprep.mubr.f32.mxu0 %v919_v3  ;;  %271 = vmatprep.mubr.f32.mxu1 %v919_v3 }
   0x2   :  { %v801_v4 = vpack.c.bf16 %v29_v1, %v16_v0  ;;  %v28_v5 = vld [vmem:[%s1439_s0 + $0x68] sm:$0xff]  ;;  %v18_v6 = vld [vmem:[%s1439_s0 + $0x18] sm:$0xff]  ;;  %v31_v7 = vld [vmem:[%s1439_s0 + $0x80] sm:$0xff] }
   0x3   :  { %v803_v8 = vpack.c.bf16 %v28_v5, %v15_v2  ;;  %v817_v9 = vpack.c.bf16 %v31_v7, %v18_v6  ;;  %v42_v10 = vld [vmem:[%s1439_s0 + $0xd8] sm:$0xff]  ;;  %v55_v11 = vld [vmem:[%s1439_s0 + $0x140] sm:$0xff]  ;;  %v17_v12 = vld [vmem:[%s1439_s0 + $0x10] sm:$0xff] }
   0x4   :  { %802 = vmatprep.subr.bf16.mxu0 %v801_v4  ;;  %v805_v13 = vpack.c.bf16 %v55_v11, %v42_v10  ;;  %v30_v14 = vld [vmem:[%s1439_s0 + $0x78] sm:$0xff]  ;;  %v41_v15 = vld [vmem:[%s1439_s0 + $0xd0] sm:$0xff]  ;;  %v44_v19 = vld [vmem:[%s1439_s0 + $0xe8] sm:$0xff] }
   0x5   :  { %v54_v16 = vld [vmem:[%s1439_s0 + $0x138] sm:$0xff]  ;;  %804 = vmatpush1.bf16.msra.mxu0 %v803_v8  ;;  %818 = vmatprep.subr.bf16.mxu1 %v817_v9  ;;  %v819_v17 = vpack.c.bf16 %v30_v14, %v17_v12  ;;  %v57_v20 = vld [vmem:[%s1439_s0 + $0x150] sm:$0xff]  ;;  %v68_v21 = vld [vmem:[%s1439_s0 + $0x1a8] sm:$0xff] }
   0x6   :  { %v807_v18 = vpack.c.bf16 %v54_v16, %v41_v15  ;;  %806 = vmatprep.subr.bf16.mxu0 %v805_v13  ;;  %v821_v22 = vpack.c.bf16 %v57_v20, %v44_v19  ;;  %v81_v23 = vld [vmem:[%s1439_s0 + $0x210] sm:$0xff]  ;;  %v43_v24 = vld [vmem:[%s1439_s0 + $0xe0] sm:$0xff]  ;;  %v56_v25 = vld [vmem:[%s1439_s0 + $0x148] sm:$0xff] }
   0x7   :  { %820 = vmatpush1.bf16.msra.mxu1 %v819_v17  ;;  %v809_v26 = vpack.c.bf16 %v81_v23, %v68_v21  ;;  %v823_v27 = vpack.c.bf16 %v56_v25, %v43_v24  ;;  %v67_v28 = vld [vmem:[%s1439_s0 + $0x1a0] sm:$0xff]  ;;  %v80_v29 = vld [vmem:[%s1439_s0 + $0x208] sm:$0xff]  ;;  %v70_v30 = vld [vmem:[%s1439_s0 + $0x1b8] sm:$0xff] }
   0x8   :  { %822 = vmatprep.subr.bf16.mxu1 %v821_v22  ;;  %v83_v31 = vld [vmem:[%s1439_s0 + $0x220] sm:$0xff]  ;;  %v94_v32 = vld [vmem:[%s1439_s0 + $0x278] sm:$0xff]  ;;  %v811_v34 = vpack.c.bf16 %v80_v29, %v67_v28  ;;  %v69_v36 = vld [vmem:[%s1439_s0 + $0x1b0] sm:$0xff] }
   0x9   :  { %v107_v33 = vld [vmem:[%s1439_s0 + $0x2e0] sm:$0xff]  ;;  %808 = vmatpush1.bf16.msra.mxu0 %v807_v18  ;;  %v825_v35 = vpack.c.bf16 %v83_v31, %v70_v30  ;;  %v82_v37 = vld [vmem:[%s1439_s0 + $0x218] sm:$0xff]  ;;  %v93_v38 = vld [vmem:[%s1439_s0 + $0x270] sm:$0xff] }
   0xa   :  { %810 = vmatprep.subr.bf16.mxu0 %v809_v26  ;;  %v813_v39 = vpack.c.bf16 %v107_v33, %v94_v32  ;;  %v106_v40 = vld [vmem:[%s1439_s0 + $0x2d8] sm:$0xff]  ;;  %v96_v41 = vld [vmem:[%s1439_s0 + $0x288] sm:$0xff]  ;;  %v109_v42 = vld [vmem:[%s1439_s0 + $0x2f0] sm:$0xff]  ;;  %v827_v43 = vpack.c.bf16 %v82_v37, %v69_v36 }
   0xb   :  { %824 = vmatpush1.bf16.msra.mxu1 %v823_v27  ;;  %v829_v44 = vpack.c.bf16 %v109_v42, %v96_v41  ;;  %v95_v45 = vld [vmem:[%s1439_s0 + $0x280] sm:$0xff]  ;;  %v108_v46 = vld [vmem:[%s1439_s0 + $0x2e8] sm:$0xff]  ;;  %v815_v47 = vpack.c.bf16 %v106_v40, %v93_v38  ;;  %v33_v51 = vld [vmem:[%s1439_s0 + $0x90] sm:$0xff] }
   0xc   :  { %826 = vmatprep.subr.bf16.mxu1 %v825_v35  ;;  %v120_v48 = vld [vmem:[%s1439_s0 + $0x348] sm:$0xff]  ;;  %v831_v49 = vpack.c.bf16 %v108_v46, %v95_v45  ;;  %v119_v52 = vld [vmem:[%s1439_s0 + $0x340] sm:$0xff]  ;;  %v122_v56 = vld [vmem:[%s1439_s0 + $0x358] sm:$0xff] }
   0xd   :  { %812 = vmatpush1.bf16.msra.mxu0 %v811_v34  ;;  %v20_v50 = vld [vmem:[%s1439_s0 + $0x28] sm:$0xff]  ;;  %v19_v53 = vld [vmem:[%s1439_s0 + $0x20] sm:$0xff]  ;;  %v46_v57 = vld [vmem:[%s1439_s0 + $0xf8] sm:$0xff] }
   0xe   :  { %814 = vmatprep.subr.bf16.mxu0 %v813_v39  ;;  %v32_v54 = vld [vmem:[%s1439_s0 + $0x88] sm:$0xff]  ;;  %v1063_v55 = vld [vmem:[%s1440_s1] sm:$0xff]  ;;  %v833_v59 = vpack.c.bf16 %v33_v51, %v20_v50  ;;  %v121_v60 = vld [vmem:[%s1439_s0 + $0x350] sm:$0xff] }
   0xf   :  { %828 = vmatpush1.bf16.msra.mxu1 %v827_v43  ;;  %v59_v58 = vld [vmem:[%s1439_s0 + $0x160] sm:$0xff]  ;;  %v22_v61 = vld [vmem:[%s1439_s0 + $0x38] sm:$0xff]  ;;  %v835_v63 = vpack.c.bf16 %v32_v54, %v19_v53  ;;  %v45_v0 = vld [vmem:[%s1439_s0 + $0xf0] sm:$0xff] }
  0x10   :  { %830 = vmatprep.subr.bf16.mxu1 %v829_v44  ;;  %v35_v62 = vld [vmem:[%s1439_s0 + $0xa0] sm:$0xff]  ;;  %v21_v1 = vld [vmem:[%s1439_s0 + $0x30] sm:$0xff]  ;;  %v34_v2 = vld [vmem:[%s1439_s0 + $0x98] sm:$0xff]  ;;  %v837_v4 = vpack.c.bf16 %v59_v58, %v46_v57 }
  0x11   :  { %816 = vmatpush1.bf16.msra.mxu0 %v815_v47  ;;  %v58_v5 = vld [vmem:[%s1439_s0 + $0x158] sm:$0xff]  ;;  %v48_v6 = vld [vmem:[%s1439_s0 + $0x108] sm:$0xff]  ;;  %v61_v7 = vld [vmem:[%s1439_s0 + $0x170] sm:$0xff]  ;;  %v849_v8 = vpack.c.bf16 %v35_v62, %v22_v61  ;;  %v851_v11 = vpack.c.bf16 %v34_v2, %v21_v1 }
  0x12   :  { %152 = vmatprep.subr.mxu0 %v120_v48  ;;  %v72_v9 = vld [vmem:[%s1439_s0 + $0x1c8] sm:$0xff]  ;;  %v85_v10 = vld [vmem:[%s1439_s0 + $0x230] sm:$0xff]  ;;  %v839_v12 = vpack.c.bf16 %v58_v5, %v45_v0  ;;  %v853_v13 = vpack.c.bf16 %v61_v7, %v48_v6  ;;  %v71_v14 = vld [vmem:[%s1439_s0 + $0x1c0] sm:$0xff] }
  0x13   :  { %832 = vmatpush1.bf16.msra.mxu1 %v831_v49  ;;  %v47_v15 = vld [vmem:[%s1439_s0 + $0x100] sm:$0xff]  ;;  %v60_v16 = vld [vmem:[%s1439_s0 + $0x168] sm:$0xff]  ;;  %v841_v17 = vpack.c.bf16 %v85_v10, %v72_v9  ;;  %v74_v19 = vld [vmem:[%s1439_s0 + $0x1d8] sm:$0xff] }
  0x14   :  { %223 = vmatprep.subr.mxu1 %v122_v56  ;;  %v84_v18 = vld [vmem:[%s1439_s0 + $0x228] sm:$0xff]  ;;  %v87_v20 = vld [vmem:[%s1439_s0 + $0x240] sm:$0xff]  ;;  %v98_v21 = vld [vmem:[%s1439_s0 + $0x298] sm:$0xff]  ;;  %v855_v23 = vpack.c.bf16 %v60_v16, %v47_v15 }
  0x15   :  { %153 = vmatpush1.msra.mxu0 %v119_v52  ;;  %v111_v22 = vld [vmem:[%s1439_s0 + $0x300] sm:$0xff]  ;;  %v843_v24 = vpack.c.bf16 %v84_v18, %v71_v14  ;;  %v857_v25 = vpack.c.bf16 %v87_v20, %v74_v19  ;;  %v97_v26 = vld [vmem:[%s1439_s0 + $0x290] sm:$0xff]  ;;  %v86_v28 = vld [vmem:[%s1439_s0 + $0x238] sm:$0xff] }
  0x16   :  { %763 = vmatmul.mubr.msk.f32.vlgmr.msra.gmra.mrb[0].mxu0 %vm132_vm0, %v1063_v55  ;;  %834 = vmatprep.subr.bf16.mxu0 %v833_v59  ;;  %v73_v27 = vld [vmem:[%s1439_s0 + $0x1d0] sm:$0xff]  ;;  %v845_v29 = vpack.c.bf16 %v111_v22, %v98_v21  ;;  %v110_v30 = vld [vmem:[%s1439_s0 + $0x2f8] sm:$0xff]  ;;  %v100_v31 = vld [vmem:[%s1439_s0 + $0x2a8] sm:$0xff] }
  0x17   :  { %836 = vmatpush1.bf16.msra.mxu0 %v835_v63  ;;  %224 = vmatpush1.msra.mxu1 %v121_v60  ;;  %v113_v32 = vld [vmem:[%s1439_s0 + $0x310] sm:$0xff]  ;;  %v859_v33 = vpack.c.bf16 %v86_v28, %v73_v27  ;;  %v847_v34 = vpack.c.bf16 %v110_v30, %v97_v26  ;;  %v99_v36 = vld [vmem:[%s1439_s0 + $0x2a0] sm:$0xff]  ;;  %v112_v37 = vld [vmem:[%s1439_s0 + $0x308] sm:$0xff] }
  0x18   :  { %764 = vmatmul.mubr.msk.f32.vlgmr.msra.gmra.mrb[0].mxu1 %vm132_vm0, %v1063_v55  ;;  %838 = vmatprep.subr.bf16.mxu0 %v837_v4  ;;  %v861_v35 = vpack.c.bf16 %v113_v32, %v100_v31  ;;  %v124_v38 = vld [vmem:[%s1439_s0 + $0x368] sm:$0xff]  ;;  %v37_v40 = vld [vmem:[%s1439_s0 + $0xb0] sm:$0xff]  ;;  %v863_v41 = vpack.c.bf16 %v112_v37, %v99_v36  ;;  %v23_v42 = vld [vmem:[%s1439_s0 + $0x40] sm:$0xff] }
  0x19   :  { %850 = vmatprep.subr.bf16.mxu1 %v849_v8  ;;  %342 = vmatprep.mubr.f32.mxu0 %v919_v3  ;;  %v24_v39 = vld [vmem:[%s1439_s0 + $0x48] sm:$0xff]  ;;  %v123_v44 = vld [vmem:[%s1439_s0 + $0x360] sm:$0xff]  ;;  %v50_v45 = vld [vmem:[%s1439_s0 + $0x118] sm:$0xff] }
  0x1a   :  { %852 = vmatpush1.bf16.msra.mxu1 %v851_v11  ;;  %413 = vmatprep.mubr.f32.mxu1 %v919_v3  ;;  %v36_v43 = vld [vmem:[%s1439_s0 + $0xa8] sm:$0xff]  ;;  %v63_v46 = vld [vmem:[%s1439_s0 + $0x180] sm:$0xff]  ;;  %v865_v47 = vpack.c.bf16 %v37_v40, %v24_v39  ;;  %v126_v48 = vld [vmem:[%s1439_s0 + $0x378] sm:$0xff] }
  0x1b   :  { %840 = vmatpush1.bf16.msra.mxu0 %v839_v12  ;;  %854 = vmatprep.subr.bf16.mxu1 %v853_v13  ;;  %v26_v49 = vld [vmem:[%s1439_s0 + $0x58] sm:$0xff]  ;;  %v39_v50 = vld [vmem:[%s1439_s0 + $0xc0] sm:$0xff]  ;;  %v867_v51 = vpack.c.bf16 %v36_v43, %v23_v42  ;;  %v49_v52 = vld [vmem:[%s1439_s0 + $0x110] sm:$0xff]  ;;  %v869_v56 = vpack.c.bf16 %v63_v46, %v50_v45 }
  0x1c   :  { %842 = vmatprep.subr.bf16.mxu0 %v841_v17  ;;  %v25_v53 = vld [vmem:[%s1439_s0 + $0x50] sm:$0xff]  ;;  %v38_v54 = vld [vmem:[%s1439_s0 + $0xb8] sm:$0xff]  ;;  %v52_v58 = vld [vmem:[%s1439_s0 + $0x128] sm:$0xff]  ;;  %v881_v61 = vpack.c.bf16 %v39_v50, %v26_v49 }
  0x1d   :  { %v62_v57 = vld [vmem:[%s1439_s0 + $0x178] sm:$0xff]  ;;  %v65_v59 = vld [vmem:[%s1439_s0 + $0x190] sm:$0xff]  ;;  %v76_v62 = vld [vmem:[%s1439_s0 + $0x1e8] sm:$0xff]  ;;  %v883_v0 = vpack.c.bf16 %v38_v54, %v25_v53 }
  0x1e   :  { %856 = vmatpush1.bf16.msra.mxu1 %v855_v23  ;;  %v125_v60 = vld [vmem:[%s1439_s0 + $0x370] sm:$0xff]  ;;  %v871_v1 = vpack.c.bf16 %v62_v57, %v49_v52  ;;  %v885_v2 = vpack.c.bf16 %v65_v59, %v52_v58  ;;  %v75_v4 = vld [vmem:[%s1439_s0 + $0x1e0] sm:$0xff]  ;;  %v64_v6 = vld [vmem:[%s1439_s0 + $0x188] sm:$0xff] }
  0x1f   :  { %844 = vmatpush1.bf16.msra.mxu0 %v843_v24  ;;  %858 = vmatprep.subr.bf16.mxu1 %v857_v25  ;;  %v89_v63 = vld [vmem:[%s1439_s0 + $0x250] sm:$0xff]  ;;  %v51_v5 = vld [vmem:[%s1439_s0 + $0x120] sm:$0xff]  ;;  %v88_v8 = vld [vmem:[%s1439_s0 + $0x248] sm:$0xff] }
  0x20   :  { %846 = vmatprep.subr.bf16.mxu0 %v845_v29  ;;  %v873_v7 = vpack.c.bf16 %v89_v63, %v76_v62  ;;  %v78_v9 = vld [vmem:[%s1439_s0 + $0x1f8] sm:$0xff]  ;;  %v91_v10 = vld [vmem:[%s1439_s0 + $0x260] sm:$0xff]  ;;  %v887_v13 = vpack.c.bf16 %v64_v6, %v51_v5  ;;  %v875_v14 = vpack.c.bf16 %v88_v8, %v75_v4  ;;  %v101_v16 = vld [vmem:[%s1439_s0 + $0x2b0] sm:$0xff] }
  0x21   :  { %v102_v11 = vld [vmem:[%s1439_s0 + $0x2b8] sm:$0xff]  ;;  %v115_v12 = vld [vmem:[%s1439_s0 + $0x320] sm:$0xff]  ;;  %v889_v15 = vpack.c.bf16 %v91_v10, %v78_v9  ;;  %v77_v17 = vld [vmem:[%s1439_s0 + $0x1f0] sm:$0xff] }
  0x22   :  { %860 = vmatpush1.bf16.msra.mxu1 %v859_v33  ;;  %v90_v18 = vld [vmem:[%s1439_s0 + $0x258] sm:$0xff]  ;;  %v877_v19 = vpack.c.bf16 %v115_v12, %v102_v11  ;;  %v104_v21 = vld [vmem:[%s1439_s0 + $0x2c8] sm:$0xff]  ;;  %v117_v22 = vld [vmem:[%s1439_s0 + $0x330] sm:$0xff] }
  0x23   :  { %848 = vmatpush1.bf16.msra.mxu0 %v847_v34  ;;  %862 = vmatprep.subr.bf16.mxu1 %v861_v35  ;;  %v114_v20 = vld [vmem:[%s1439_s0 + $0x318] sm:$0xff]  ;;  %v891_v23 = vpack.c.bf16 %v90_v18, %v77_v17  ;;  %v893_v25 = vpack.c.bf16 %v117_v22, %v104_v21  ;;  %v103_v26 = vld [vmem:[%s1439_s0 + $0x2c0] sm:$0xff]  ;;  %v116_v27 = vld [vmem:[%s1439_s0 + $0x328] sm:$0xff] }
  0x24   :  { %294 = vmatprep.subr.mxu0 %v124_v38  ;;  %v879_v24 = vpack.c.bf16 %v114_v20, %v101_v16  ;;  %v128_v28 = vld [vmem:[%s1439_s0 + $0x388] sm:$0xff]  ;;  %v895_v29 = vpack.c.bf16 %v116_v27, %v103_v26  ;;  %v27_v30 = vld [vmem:[%s1439_s0 + $0x60] sm:$0xff]  ;;  %v130_v33 = vld [vmem:[%s1439_s0 + $0x398] sm:$0xff]  ;;  %v920_v38 = vmov 0.0|0.0  }
  0x25   :  { %v40_v31 = vld [vmem:[%s1439_s0 + $0xc8] sm:$0xff]  ;;  %v127_v32 = vld [vmem:[%s1439_s0 + $0x380] sm:$0xff]  ;;  %v53_v35 = vld [vmem:[%s1439_s0 + $0x130] sm:$0xff] }
  0x26   :  { %864 = vmatpush1.bf16.msra.mxu1 %v863_v41  ;;  %v898_v34 = vpack.c.bf16 %v40_v31, %v27_v30  ;;  %v66_v36 = vld [vmem:[%s1439_s0 + $0x198] sm:$0xff]  ;;  %v129_v37 = vld [vmem:[%s1439_s0 + $0x390] sm:$0xff]  ;;  %v79_v40 = vld [vmem:[%s1439_s0 + $0x200] sm:$0xff] }
  0x27   :  { %295 = vmatpush1.msra.mxu0 %v123_v44  ;;  %365 = vmatprep.subr.mxu1 %v126_v48  ;;  %v901_v39 = vpack.c.bf16 %v66_v36, %v53_v35  ;;  %v92_v41 = vld [vmem:[%s1439_s0 + $0x268] sm:$0xff]  ;;  %v105_v43 = vld [vmem:[%s1439_s0 + $0x2d0] sm:$0xff]  ;;  %v118_v44 = vld [vmem:[%s1439_s0 + $0x338] sm:$0xff] }
  0x28   :  { %765 = vmatmul.mubr.msk.f32.vlgmr.msra.gmra.mrb[2].mxu0 %vm132_vm0, %v1063_v55  ;;  %866 = vmatprep.subr.bf16.mxu0 %v865_v47  ;;  %v904_v42 = vpack.c.bf16 %v92_v41, %v79_v40  ;;  %v907_v45 = vpack.c.bf16 %v118_v44, %v105_v43  ;;  %v131_v46 = vld [vmem:[%s1439_s0 + $0x3a0] sm:$0xff] }
  0x29   :  { %868 = vmatpush1.bf16.msra.mxu0 %v867_v51  ;;  %484 = vmatprep.mubr.f32.mxu0 %v919_v3 }
  0x2a   :  { %366 = vmatpush1.msra.mxu1 %v125_v60  ;;  %870 = vmatprep.subr.bf16.mxu0 %v869_v56 }
  0x2b   :  { %766 = vmatmul.mubr.msk.f32.vlgmr.msra.gmra.mrb[2].mxu1 %vm132_vm0, %v1063_v55  ;;  %882 = vmatprep.subr.bf16.mxu1 %v881_v61 }
  0x2c   :  { %884 = vmatpush1.bf16.msra.mxu1 %v883_v0  ;;  %555 = vmatprep.mubr.f32.mxu1 %v919_v3 }
  0x2d   :  { %872 = vmatpush1.bf16.msra.mxu0 %v871_v1  ;;  %886 = vmatprep.subr.bf16.mxu1 %v885_v2 }
  0x2e   :  { %874 = vmatprep.subr.bf16.mxu0 %v873_v7 }
  0x30   :  { %888 = vmatpush1.bf16.msra.mxu1 %v887_v13 }
  0x31   :  { %876 = vmatpush1.bf16.msra.mxu0 %v875_v14  ;;  %890 = vmatprep.subr.bf16.mxu1 %v889_v15 }
  0x32   :  { %878 = vmatprep.subr.bf16.mxu0 %v877_v19 }
  0x34   :  { %892 = vmatpush1.bf16.msra.mxu1 %v891_v23 }
  0x35   :  { %880 = vmatpush1.bf16.msra.mxu0 %v879_v24  ;;  %894 = vmatprep.subr.bf16.mxu1 %v893_v25 }
  0x36   :  { %436 = vmatprep.subr.mxu0 %v128_v28 }
  0x38   :  { %896 = vmatpush1.bf16.msra.mxu1 %v895_v29 }
  0x39   :  { %437 = vmatpush1.msra.mxu0 %v127_v32  ;;  %507 = vmatprep.subr.mxu1 %v130_v33 }
  0x3a   :  { %767 = vmatmul.mubr.msk.f32.vlgmr.msra.gmra.mrb[4].mxu0 %vm132_vm0, %v1063_v55  ;;  %897 = vmatprep.subr.bf16.mxu0 %v920_v38 }
  0x3b   :  { %899 = vmatpush3.bf16.msra.mxu0 %v898_v34  ;;  %798 = vmatprep.mubr.msk.f32.mxu0 %vm921_vm1, %v919_v3 }
  0x3c   :  { %508 = vmatpush1.msra.mxu1 %v129_v37  ;;  %900 = vmatprep.subr.bf16.mxu0 %v920_v38 }
  0x3d   :  { %768 = vmatmul.mubr.msk.f32.vlgmr.msra.gmra.mrb[4].mxu1 %vm132_vm0, %v1063_v55 }
  0x3f   :  { %902 = vmatpush3.bf16.msra.mxu0 %v901_v39 }
  0x40   :  { %903 = vmatprep.subr.bf16.mxu0 %v920_v38 }
  0x43   :  { %905 = vmatpush3.bf16.msra.mxu0 %v904_v42 }
  0x44   :  { %906 = vmatprep.subr.bf16.mxu0 %v920_v38 }
  0x47   :  { %908 = vmatpush3.bf16.msra.mxu0 %v907_v45 }
  0x48   :  { %796 = vmatprep.subr.mxu0 %v919_v3 }
  0x4b   :  { %797 = vmatpush3.msra.mxu0 %v131_v46 }
  0x4c   :  { %799 = vmatmul.mubr.msk.f32.vlgmr.msra.gmra.mrb[6].mxu0 %vm132_vm0, %v1063_v55 }
  0xe9   :  { %v202_v47 = vpop.f32.mrb[0].mxu0 }
  0xea   :  { %v204_v48 = vpop.f32.mrb[1].mxu0  ;;  %v1322_v51 = vmax.f32 %v202_v47, 0.0 }
  0xeb   :  { %v273_v49 = vpop.f32.mrb[0].mxu1  ;;  %v1324_v52 = vmax.f32 %v204_v48, 0.0 }
  0xec   :  { %v275_v50 = vpop.f32.mrb[1].mxu1  ;;  %v661_v3 = vmul.f32 %v1322_v51, %v1322_v51  ;;  %v1332_v55 = vmax.f32 %v273_v49, 0.0  ;;  %v922_v49 = vmov 0  }
  0xed   :  { %v645_v56 = vadd.f32 %v1324_v52, %v1322_v51  ;;  %v662_v57 = vmul.f32 %v1324_v52, %v1324_v52  ;;  %v1337_v63 = vmax.f32 %v275_v50, 0.0  ;;  %914 = vset.pattern.permute.xlu1 %v922_v49  ;;  %v923_v50 = vmov 1  }
  0xee   :  { %v663_v62 = vmul.f32 %v1332_v55, %v1332_v55  ;;  %916 = vset.pattern.permute.xlu0 %v923_v50 }
  0xef   :  { %v674_v60 = vadd.f32 %v662_v57, %v661_v3  ;;  %v646_v61 = vadd.f32 %v645_v56, %v1332_v55  ;;  %v664_v4 = vmul.f32 %v1337_v63, %v1337_v63 }
  0xf1   :  { %v675_v1 = vadd.f32 %v674_v60, %v663_v62  ;;  %v647_v2 = vadd.f32 %v646_v61, %v1337_v63  ;;  %v695_v60 = vld [vmem:[%s1441_s2] sm:$0xff] }
  0xf3   :  { %v676_v8 = vadd.f32 %v675_v1, %v664_v4 }
  0xfb   :  { %v344_v53 = vpop.f32.mrb[2].mxu0 }
  0xfc   :  { %v346_v54 = vpop.f32.mrb[3].mxu0  ;;  %v1339_v0 = vmax.f32 %v344_v53, 0.0 }
  0xfd   :  { %v1347_v7 = vmax.f32 %v346_v54, 0.0 }
  0xfe   :  { %v415_v58 = vpop.f32.mrb[2].mxu1  ;;  %v648_v5 = vadd.f32 %v647_v2, %v1339_v0  ;;  %v665_v6 = vmul.f32 %v1339_v0, %v1339_v0 }
  0xff   :  { %v417_v59 = vpop.f32.mrb[3].mxu1  ;;  %v666_v11 = vmul.f32 %v1347_v7, %v1347_v7  ;;  %v1352_v12 = vmax.f32 %v415_v58, 0.0 }
 0x100   :  { %v677_v9 = vadd.f32 %v676_v8, %v665_v6  ;;  %v649_v10 = vadd.f32 %v648_v5, %v1347_v7  ;;  %v1357_v18 = vmax.f32 %v417_v59, 0.0 }
 0x101   :  { %v667_v17 = vmul.f32 %v1352_v12, %v1352_v12 }
 0x102   :  { %v678_v15 = vadd.f32 %v677_v9, %v666_v11  ;;  %v650_v16 = vadd.f32 %v649_v10, %v1352_v12  ;;  %v668_v24 = vmul.f32 %v1357_v18, %v1357_v18 }
 0x104   :  { %v679_v22 = vadd.f32 %v678_v15, %v667_v17  ;;  %v651_v23 = vadd.f32 %v650_v16, %v1357_v18 }
 0x106   :  { %v680_v28 = vadd.f32 %v679_v22, %v668_v24 }
 0x10d   :  { %v486_v13 = vpop.f32.mrb[4].mxu0 }
 0x10e   :  { %v488_v14 = vpop.f32.mrb[5].mxu0  ;;  %v1359_v20 = vmax.f32 %v486_v13, 0.0 }
 0x10f   :  { %v1367_v27 = vmax.f32 %v488_v14, 0.0 }
 0x110   :  { %v557_v19 = vpop.f32.mrb[4].mxu1  ;;  %v652_v25 = vadd.f32 %v651_v23, %v1359_v20  ;;  %v669_v26 = vmul.f32 %v1359_v20, %v1359_v20 }
 0x111   :  { %v559_v21 = vpop.f32.mrb[5].mxu1  ;;  %v670_v31 = vmul.f32 %v1367_v27, %v1367_v27  ;;  %v1372_v32 = vmax.f32 %v557_v19, 0.0 }
 0x112   :  { %v681_v29 = vadd.f32 %v680_v28, %v669_v26  ;;  %v653_v30 = vadd.f32 %v652_v25, %v1367_v27  ;;  %v1376_v35 = vmax.f32 %v559_v21, 0.0 }
 0x113   :  { %v671_v34 = vmul.f32 %v1372_v32, %v1372_v32 }
 0x114   :  { %v682_v33 = vadd.f32 %v681_v29, %v670_v31  ;;  %v654_v36 = vadd.f32 %v653_v30, %v1372_v32  ;;  %v672_v40 = vmul.f32 %v1376_v35, %v1376_v35 }
 0x116   :  { %v655_v41 = vadd.f32 %v654_v36, %v1376_v35  ;;  %v683_v42 = vadd.f32 %v682_v33, %v671_v34 }
 0x118   :  { %v684_v47 = vadd.f32 %v683_v42, %v672_v40 }
 0x11f   :  { %v628_v37 = vpop.f32.mrb[6].mxu0 }
 0x120   :  { %v644_v38 = vmax.f32 %v628_v37, 0.0  ;;  %v800_v39 = vpop.f32.mrb[7].mxu0 }
 0x122   :  { %v657_v43 = vsel %vm656_vm2, %v644_v38, 0.0  ;;  %v673_v44 = vmul.f32 %v644_v38, %v644_v38 }
 0x123   :  { %v658_v45 = vadd.f32 %v657_v43, %v655_v41 }
 0x124   :  { %v685_v46 = vsel %vm656_vm2, %v673_v44, 0.0 }
 0x125   :  { %659 = vadd.xlane.f32.xlu0 %v658_v45  ;;  %v686_v48 = vadd.f32 %v685_v46, %v684_v47 }
 0x129   :  { %687 = vadd.xlane.f32.xlu0 %v686_v48 }
 0x1b2   :  { %v660_v53 = vpop.xlane.xlu0 %659 }
 0x1b3   :  { %v689_v54 = vmul.f32 0.0006377551, %v660_v53 }
 0x1b5   :  { %v691_v56 = vmul.f32 %v689_v54, %v689_v54  ;;  %v696_v1 = vsub.f32 %v1322_v51, %v689_v54  ;;  %v697_v2 = vsub.f32 %v1324_v52, %v689_v54  ;;  %v698_v5 = vsub.f32 %v1332_v55, %v689_v54 }
 0x1b6   :  { %v688_v3 = vpop.xlane.xlu0 %687  ;;  %v699_v6 = vsub.f32 %v1337_v63, %v689_v54  ;;  %v700_v8 = vsub.f32 %v1339_v0, %v689_v54  ;;  %v701_v9 = vsub.f32 %v1347_v7, %v689_v54  ;;  %v702_v10 = vsub.f32 %v1352_v12, %v689_v54 }
 0x1b7   :  { %v690_v57 = vmul.f32 0.0006377551, %v688_v3  ;;  %v703_v11 = vsub.f32 %v1357_v18, %v689_v54  ;;  %v704_v13 = vsub.f32 %v1359_v20, %v689_v54  ;;  %v705_v14 = vsub.f32 %v1367_v27, %v689_v54 }
 0x1b8   :  { %v706_v51 = vsub.f32 %v1372_v32, %v689_v54  ;;  %v707_v52 = vsub.f32 %v1376_v35, %v689_v54  ;;  %v708_v15 = vsub.f32 %v644_v38, %v689_v54 }
 0x1b9   :  { %v692_v58 = vsub.f32 %v690_v57, %v691_v56 }
 0x1bb   :  { %v693_v59 = vadd.f32 1e-05, %v692_v58 }
 0x1bd   :  { %917 = vrsqrt.f32 %v693_v59 }
 0x1c7   :  { %v918_v61 = vpop.eup %917 }
 0x1c8   :  { %v709_v62 = vmul.f32 %v918_v61, %v695_v60 }
 0x1ca   :  { %712 = vperm.xlu1 %914, %v709_v62  }
 0x1ce   :  { %915 = vset.pattern.permute.xlu1 %v923_v50 }
 0x1cf   :  { %730 = vperm.xlu1 %915, %v695_v60  }
 0x249   :  { %v713_v4 = vpop.permute.xlu1 %712 }
 0x24a   :  { %v715_v55 = vmul.f32 %v713_v4, %v696_v1  ;;  %v716_v16 = vmul.f32 %v713_v4, %v697_v2  ;;  %v717_v63 = vmul.f32 %v713_v4, %v698_v5  ;;  %v718_v17 = vmul.f32 %v713_v4, %v699_v6 }
 0x24b   :  { %v719_v0 = vmul.f32 %v713_v4, %v700_v8  ;;  %v720_v19 = vmul.f32 %v713_v4, %v701_v9  ;;  %v721_v7 = vmul.f32 %v713_v4, %v702_v10  ;;  %v722_v21 = vmul.f32 %v713_v4, %v703_v11 }
 0x24c   :  { %v723_v12 = vmul.f32 %v713_v4, %v704_v13  ;;  %v724_v22 = vmul.f32 %v713_v4, %v705_v14  ;;  %v725_v18 = vmul.f32 %v713_v4, %v706_v51  ;;  %v726_v23 = vmul.f32 %v713_v4, %v707_v52 }
 0x24d   :  { %v727_v20 = vmul.f32 %v713_v4, %v708_v15 }
 0x24e   :  { %v731_v24 = vpop.permute.xlu1 %730 }
 0x24f   :  { %v733_v25 = vadd.f32 %v731_v24, %v715_v55  ;;  %v734_v26 = vadd.f32 %v731_v24, %v716_v16  ;;  %v735_v27 = vadd.f32 %v731_v24, %v717_v63  ;;  %v736_v28 = vadd.f32 %v731_v24, %v718_v17 }
 0x250   :  { %v737_v29 = vadd.f32 %v731_v24, %v719_v0  ;;  %v738_v30 = vadd.f32 %v731_v24, %v720_v19  ;;  %v739_v31 = vadd.f32 %v731_v24, %v721_v7  ;;  %v740_v32 = vadd.f32 %v731_v24, %v722_v21 }
 0x251   :  { %v741_v33 = vadd.f32 %v731_v24, %v723_v12  ;;  %v742_v34 = vadd.f32 %v731_v24, %v724_v22  ;;  %v743_v35 = vadd.f32 %v731_v24, %v725_v18  ;;  %v744_v36 = vadd.f32 %v731_v24, %v726_v23  ;;  %746 = vst [vmem:[%s1442_s3] sm:$0xff] %v733_v25 }
 0x252   :  { %747 = vst [vmem:[%s1442_s3 + $0x8] sm:$0xff] %v734_v26  ;;  %748 = vst [vmem:[%s1442_s3 + $0x10] sm:$0xff] %v735_v27  ;;  %v745_v37 = vadd.f32 %v731_v24, %v727_v20 }
 0x253   :  { %749 = vst [vmem:[%s1442_s3 + $0x18] sm:$0xff] %v736_v28  ;;  %750 = vst [vmem:[%s1442_s3 + $0x20] sm:$0xff] %v737_v29 }
 0x254   :  { %751 = vst [vmem:[%s1442_s3 + $0x28] sm:$0xff] %v738_v30  ;;  %752 = vst [vmem:[%s1442_s3 + $0x30] sm:$0xff] %v739_v31 }
 0x255   :  { %753 = vst [vmem:[%s1442_s3 + $0x38] sm:$0xff] %v740_v32  ;;  %754 = vst [vmem:[%s1442_s3 + $0x40] sm:$0xff] %v741_v33 }
 0x256   :  { %755 = vst [vmem:[%s1442_s3 + $0x48] sm:$0xff] %v742_v34  ;;  %756 = vst [vmem:[%s1442_s3 + $0x50] sm:$0xff] %v743_v35 }
 0x257   :  { %757 = vst [vmem:[%s1442_s3 + $0x58] sm:$0xff] %v744_v36  ;;  %758 = vst.msk [vmem:[%s1442_s3 + $0x60] sm:$0xff] %vm656_vm2, %v745_v37 }

// kernel: mnist_medium_forward.9
= control target key start
LH: loop header
LB: loop body
LE: loop exit
PB: predicated region body
PF: predicated region fallthrough
CT: control target
= control target key end

     0   :  { %v298_v3 = vmov 0.0   ;;  %vm51_vm0 = vcmask 588800   ;;  %vm203_vm1 = vcmask 64512   ;;  %s450_s0 = inlined_call_operand.vmem [shape: f32[72,392], index: 0, kind: input, shape index: {}]   ;;  %s451_s1 = inlined_call_operand.vmem [shape: f32[8,72], index: 1, kind: input, shape index: {}]   ;;  %s452_s2 = inlined_call_operand.vmem [shape: f32[8,2], index: 2, kind: input, shape index: {}]   ;;  %s453_s3 = inlined_call_operand.vmem [shape: f32[8,392], index: 3, kind: output, shape index: {}]  }
   0x1   :  { %v16_v0 = vld [vmem:[%s450_s0 + $0x8] sm:$0xff]  ;;  %v15_v2 = vld [vmem:[%s450_s0] sm:$0xff]  ;;  %119 = vmatprep.mubr.f32.mxu0 %v298_v3  ;;  %190 = vmatprep.mubr.f32.mxu1 %v298_v3  ;;  %v18_v6 = vld [vmem:[%s450_s0 + $0x18] sm:$0xff] }
   0x2   :  { %v20_v1 = vld [vmem:[%s450_s0 + $0x28] sm:$0xff]  ;;  %v19_v5 = vld [vmem:[%s450_s0 + $0x20] sm:$0xff]  ;;  %v22_v7 = vld [vmem:[%s450_s0 + $0x38] sm:$0xff] }
   0x3   :  { %v258_v4 = vpack.c.bf16 %v20_v1, %v16_v0  ;;  %v260_v8 = vpack.c.bf16 %v19_v5, %v15_v2  ;;  %v274_v9 = vpack.c.bf16 %v22_v7, %v18_v6  ;;  %v17_v10 = vld [vmem:[%s450_s0 + $0x10] sm:$0xff]  ;;  %v24_v12 = vld [vmem:[%s450_s0 + $0x48] sm:$0xff]  ;;  %v23_v15 = vld [vmem:[%s450_s0 + $0x40] sm:$0xff] }
   0x4   :  { %v21_v11 = vld [vmem:[%s450_s0 + $0x30] sm:$0xff]  ;;  %v28_v14 = vld [vmem:[%s450_s0 + $0x68] sm:$0xff]  ;;  %v27_v16 = vld [vmem:[%s450_s0 + $0x60] sm:$0xff] }
   0x5   :  { %259 = vmatprep.subr.bf16.mxu0 %v258_v4  ;;  %v276_v13 = vpack.c.bf16 %v21_v11, %v17_v10  ;;  %275 = vmatprep.subr.bf16.mxu1 %v274_v9  ;;  %v262_v17 = vpack.c.bf16 %v28_v14, %v24_v12  ;;  %v264_v18 = vpack.c.bf16 %v27_v16, %v23_v15  ;;  %v26_v19 = vld [vmem:[%s450_s0 + $0x58] sm:$0xff]  ;;  %v25_v21 = vld [vmem:[%s450_s0 + $0x50] sm:$0xff]  ;;  %v32_v24 = vld [vmem:[%s450_s0 + $0x88] sm:$0xff]  ;;  %v299_v10 = vmov 0  }
   0x6   :  { %261 = vmatpush1.bf16.msra.mxu0 %v260_v8  ;;  %v30_v20 = vld [vmem:[%s450_s0 + $0x78] sm:$0xff]  ;;  %v29_v23 = vld [vmem:[%s450_s0 + $0x70] sm:$0xff]  ;;  %v36_v25 = vld [vmem:[%s450_s0 + $0xa8] sm:$0xff]  ;;  %293 = vset.pattern.permute.xlu1 %v299_v10  ;;  %v300_v11 = vmov 1  }
   0x7   :  { %277 = vmatpush1.bf16.msra.mxu1 %v276_v13  ;;  %v278_v22 = vpack.c.bf16 %v30_v20, %v26_v19  ;;  %263 = vmatprep.subr.bf16.mxu0 %v262_v17  ;;  %v280_v26 = vpack.c.bf16 %v29_v23, %v25_v21  ;;  %v266_v27 = vpack.c.bf16 %v36_v25, %v32_v24  ;;  %v31_v28 = vld [vmem:[%s450_s0 + $0x80] sm:$0xff]  ;;  %v34_v30 = vld [vmem:[%s450_s0 + $0x98] sm:$0xff]  ;;  %v33_v32 = vld [vmem:[%s450_s0 + $0x90] sm:$0xff] }
   0x8   :  { %v35_v29 = vld [vmem:[%s450_s0 + $0xa0] sm:$0xff]  ;;  %v38_v31 = vld [vmem:[%s450_s0 + $0xb8] sm:$0xff]  ;;  %v37_v33 = vld [vmem:[%s450_s0 + $0xb0] sm:$0xff]  ;;  %295 = vset.pattern.permute.xlu0 %v300_v11 }
   0x9   :  { %279 = vmatprep.subr.bf16.mxu1 %v278_v22  ;;  %v268_v34 = vpack.c.bf16 %v35_v29, %v31_v28  ;;  %v282_v35 = vpack.c.bf16 %v38_v31, %v34_v30  ;;  %v40_v36 = vld [vmem:[%s450_s0 + $0xc8] sm:$0xff]  ;;  %v39_v38 = vld [vmem:[%s450_s0 + $0xc0] sm:$0xff]  ;;  %v284_v39 = vpack.c.bf16 %v37_v33, %v33_v32  ;;  %v42_v42 = vld [vmem:[%s450_s0 + $0xd8] sm:$0xff] }
   0xa   :  { %265 = vmatpush1.bf16.msra.mxu0 %v264_v18  ;;  %v44_v37 = vld [vmem:[%s450_s0 + $0xe8] sm:$0xff]  ;;  %v43_v41 = vld [vmem:[%s450_s0 + $0xe0] sm:$0xff]  ;;  %v46_v43 = vld [vmem:[%s450_s0 + $0xf8] sm:$0xff] }
   0xb   :  { %281 = vmatpush1.bf16.msra.mxu1 %v280_v26  ;;  %267 = vmatprep.subr.bf16.mxu0 %v266_v27  ;;  %v270_v40 = vpack.c.bf16 %v44_v37, %v40_v36  ;;  %v286_v44 = vpack.c.bf16 %v46_v43, %v42_v42  ;;  %v41_v45 = vld [vmem:[%s450_s0 + $0xd0] sm:$0xff]  ;;  %v272_v47 = vpack.c.bf16 %v43_v41, %v39_v38  ;;  %v48_v49 = vld [vmem:[%s450_s0 + $0x108] sm:$0xff]  ;;  %v50_v50 = vld [vmem:[%s450_s0 + $0x118] sm:$0xff] }
   0xc   :  { %283 = vmatprep.subr.bf16.mxu1 %v282_v35  ;;  %v45_v46 = vld [vmem:[%s450_s0 + $0xf0] sm:$0xff]  ;;  %v47_v51 = vld [vmem:[%s450_s0 + $0x100] sm:$0xff] }
   0xd   :  { %v288_v48 = vpack.c.bf16 %v45_v46, %v41_v45  ;;  %v14_v52 = vld [vmem:[%s451_s1] sm:$0xff]  ;;  %v49_v53 = vld [vmem:[%s450_s0 + $0x110] sm:$0xff] }
   0xe   :  { %269 = vmatpush1.bf16.msra.mxu0 %v268_v34  ;;  %v224_v19 = vld [vmem:[%s452_s2] sm:$0xff] }
   0xf   :  { %285 = vmatpush1.bf16.msra.mxu1 %v284_v39  ;;  %271 = vmatprep.subr.bf16.mxu0 %v270_v40 }
  0x10   :  { %287 = vmatprep.subr.bf16.mxu1 %v286_v44 }
  0x12   :  { %273 = vmatpush1.bf16.msra.mxu0 %v272_v47 }
  0x13   :  { %289 = vmatpush1.bf16.msra.mxu1 %v288_v48  ;;  %71 = vmatprep.subr.mxu0 %v48_v49 }
  0x14   :  { %142 = vmatprep.subr.mxu1 %v50_v50 }
  0x16   :  { %72 = vmatpush1.msra.mxu0 %v47_v51 }
  0x17   :  { %256 = vmatmul.mubr.msk.f32.vlgmr.msra.gmra.mrb[0].mxu0 %vm51_vm0, %v14_v52  ;;  %143 = vmatpush1.msra.mxu1 %v49_v53 }
  0x18   :  { %257 = vmatmul.mubr.msk.f32.vlgmr.msra.gmra.mrb[0].mxu1 %vm51_vm0, %v14_v52 }
  0xea   :  { %v121_v54 = vpop.f32.mrb[0].mxu0 }
  0xeb   :  { %v197_v55 = vmax.f32 %v121_v54, 0.0  ;;  %v123_v56 = vpop.f32.mrb[1].mxu0  ;;  %v192_v57 = vpop.f32.mrb[0].mxu1 }
  0xec   :  { %v198_v58 = vmax.f32 %v123_v56, 0.0  ;;  %v199_v59 = vmax.f32 %v192_v57, 0.0  ;;  %v194_v60 = vpop.f32.mrb[1].mxu1 }
  0xed   :  { %v208_v61 = vmul.f32 %v197_v55, %v197_v55  ;;  %v200_v62 = vmax.f32 %v194_v60, 0.0 }
  0xee   :  { %v209_v63 = vmul.f32 %v198_v58, %v198_v58  ;;  %v210_v0 = vmul.f32 %v199_v59, %v199_v59  ;;  %v201_v1 = vadd.f32 %v198_v58, %v197_v55 }
  0xef   :  { %v211_v2 = vmul.f32 %v200_v62, %v200_v62  ;;  %v204_v3 = vsel %vm203_vm1, %v200_v62, 0.0 }
  0xf0   :  { %v202_v4 = vadd.f32 %v201_v1, %v199_v59  ;;  %v212_v5 = vadd.f32 %v209_v63, %v208_v61 }
  0xf1   :  { %v214_v8 = vsel %vm203_vm1, %v211_v2, 0.0 }
  0xf2   :  { %v205_v6 = vadd.f32 %v204_v3, %v202_v4  ;;  %v213_v7 = vadd.f32 %v212_v5, %v210_v0 }
  0xf4   :  { %206 = vadd.xlane.f32.xlu0 %v205_v6  ;;  %v215_v9 = vadd.f32 %v214_v8, %v213_v7 }
  0xf8   :  { %216 = vadd.xlane.f32.xlu0 %v215_v9 }
 0x181   :  { %v207_v12 = vpop.xlane.xlu0 %206 }
 0x182   :  { %v218_v13 = vmul.f32 0.0025510204, %v207_v12 }
 0x184   :  { %v220_v15 = vmul.f32 %v218_v13, %v218_v13  ;;  %v225_v23 = vsub.f32 %v197_v55, %v218_v13  ;;  %v226_v24 = vsub.f32 %v198_v58, %v218_v13  ;;  %v227_v25 = vsub.f32 %v199_v59, %v218_v13 }
 0x185   :  { %v217_v14 = vpop.xlane.xlu0 %216  ;;  %v228_v26 = vsub.f32 %v200_v62, %v218_v13 }
 0x186   :  { %v219_v16 = vmul.f32 0.0025510204, %v217_v14 }
 0x188   :  { %v221_v17 = vsub.f32 %v219_v16, %v220_v15 }
 0x18a   :  { %v222_v18 = vadd.f32 1e-05, %v221_v17 }
 0x18c   :  { %296 = vrsqrt.f32 %v222_v18 }
 0x196   :  { %v297_v20 = vpop.eup %296 }
 0x197   :  { %v229_v21 = vmul.f32 %v297_v20, %v224_v19 }
 0x199   :  { %232 = vperm.xlu1 %293, %v229_v21  }
 0x19d   :  { %294 = vset.pattern.permute.xlu1 %v300_v11 }
 0x19e   :  { %241 = vperm.xlu1 %294, %v224_v19  }
 0x218   :  { %v233_v22 = vpop.permute.xlu1 %232 }
 0x219   :  { %v235_v27 = vmul.f32 %v233_v22, %v225_v23  ;;  %v236_v28 = vmul.f32 %v233_v22, %v226_v24  ;;  %v237_v29 = vmul.f32 %v233_v22, %v227_v25  ;;  %v238_v30 = vmul.f32 %v233_v22, %v228_v26 }
 0x21d   :  { %v242_v31 = vpop.permute.xlu1 %241 }
 0x21e   :  { %v244_v32 = vadd.f32 %v242_v31, %v235_v27  ;;  %v245_v33 = vadd.f32 %v242_v31, %v236_v28  ;;  %v246_v34 = vadd.f32 %v242_v31, %v237_v29  ;;  %v247_v35 = vadd.f32 %v242_v31, %v238_v30 }
 0x220   :  { %248 = vst [vmem:[%s453_s3] sm:$0xff] %v244_v32  ;;  %249 = vst [vmem:[%s453_s3 + $0x8] sm:$0xff] %v245_v33 }
 0x221   :  { %250 = vst [vmem:[%s453_s3 + $0x10] sm:$0xff] %v246_v34  ;;  %251 = vst.msk [vmem:[%s453_s3 + $0x18] sm:$0xff] %vm203_vm1, %v247_v35 }

// kernel: mnist_medium_forward.10
= control target key start
LH: loop header
LB: loop body
LE: loop exit
PB: predicated region body
PF: predicated region fallthrough
CT: control target
= control target key end

     0   :  { %v374_v3 = vmov 0.0   ;;  %vm52_vm0 = vcmask 588800   ;;  %vm223_vm1 = vcmask 64512   ;;  %s599_s0 = inlined_call_operand.vmem [shape: f32[72,392], index: 0, kind: input, shape index: {}]   ;;  %s600_s1 = inlined_call_operand.vmem [shape: f32[16,72], index: 1, kind: input, shape index: {}]   ;;  %s601_s2 = inlined_call_operand.vmem [shape: f32[16,2], index: 2, kind: input, shape index: {}]   ;;  %s602_s3 = inlined_call_operand.vmem [shape: f32[16,392], index: 3, kind: output, shape index: {}]  }
   0x1   :  { %v17_v0 = vld [vmem:[%s599_s0 + $0x8] sm:$0xff]  ;;  %v16_v2 = vld [vmem:[%s599_s0] sm:$0xff]  ;;  %123 = vmatprep.mubr.f32.mxu0 %v374_v3  ;;  %200 = vmatprep.mubr.f32.mxu1 %v374_v3  ;;  %v19_v6 = vld [vmem:[%s599_s0 + $0x18] sm:$0xff] }
   0x2   :  { %v21_v1 = vld [vmem:[%s599_s0 + $0x28] sm:$0xff]  ;;  %v20_v5 = vld [vmem:[%s599_s0 + $0x20] sm:$0xff]  ;;  %v23_v7 = vld [vmem:[%s599_s0 + $0x38] sm:$0xff] }
   0x3   :  { %v330_v4 = vpack.c.bf16 %v21_v1, %v17_v0  ;;  %v332_v8 = vpack.c.bf16 %v20_v5, %v16_v2  ;;  %v346_v9 = vpack.c.bf16 %v23_v7, %v19_v6  ;;  %v18_v10 = vld [vmem:[%s599_s0 + $0x10] sm:$0xff]  ;;  %v25_v12 = vld [vmem:[%s599_s0 + $0x48] sm:$0xff]  ;;  %v24_v15 = vld [vmem:[%s599_s0 + $0x40] sm:$0xff] }
   0x4   :  { %v22_v11 = vld [vmem:[%s599_s0 + $0x30] sm:$0xff]  ;;  %v29_v14 = vld [vmem:[%s599_s0 + $0x68] sm:$0xff]  ;;  %v28_v16 = vld [vmem:[%s599_s0 + $0x60] sm:$0xff] }
   0x5   :  { %331 = vmatprep.subr.bf16.mxu0 %v330_v4  ;;  %v348_v13 = vpack.c.bf16 %v22_v11, %v18_v10  ;;  %347 = vmatprep.subr.bf16.mxu1 %v346_v9  ;;  %v334_v17 = vpack.c.bf16 %v29_v14, %v25_v12  ;;  %v336_v18 = vpack.c.bf16 %v28_v16, %v24_v15  ;;  %v27_v19 = vld [vmem:[%s599_s0 + $0x58] sm:$0xff]  ;;  %v26_v21 = vld [vmem:[%s599_s0 + $0x50] sm:$0xff]  ;;  %v33_v24 = vld [vmem:[%s599_s0 + $0x88] sm:$0xff] }
   0x6   :  { %333 = vmatpush1.bf16.msra.mxu0 %v332_v8  ;;  %v31_v20 = vld [vmem:[%s599_s0 + $0x78] sm:$0xff]  ;;  %v30_v23 = vld [vmem:[%s599_s0 + $0x70] sm:$0xff]  ;;  %v37_v25 = vld [vmem:[%s599_s0 + $0xa8] sm:$0xff] }
   0x7   :  { %349 = vmatpush1.bf16.msra.mxu1 %v348_v13  ;;  %v350_v22 = vpack.c.bf16 %v31_v20, %v27_v19  ;;  %335 = vmatprep.subr.bf16.mxu0 %v334_v17  ;;  %v352_v26 = vpack.c.bf16 %v30_v23, %v26_v21  ;;  %v338_v27 = vpack.c.bf16 %v37_v25, %v33_v24  ;;  %v32_v28 = vld [vmem:[%s599_s0 + $0x80] sm:$0xff]  ;;  %v35_v30 = vld [vmem:[%s599_s0 + $0x98] sm:$0xff]  ;;  %v34_v32 = vld [vmem:[%s599_s0 + $0x90] sm:$0xff] }
   0x8   :  { %v36_v29 = vld [vmem:[%s599_s0 + $0xa0] sm:$0xff]  ;;  %v39_v31 = vld [vmem:[%s599_s0 + $0xb8] sm:$0xff]  ;;  %v38_v33 = vld [vmem:[%s599_s0 + $0xb0] sm:$0xff] }
   0x9   :  { %351 = vmatprep.subr.bf16.mxu1 %v350_v22  ;;  %v340_v34 = vpack.c.bf16 %v36_v29, %v32_v28  ;;  %v354_v35 = vpack.c.bf16 %v39_v31, %v35_v30  ;;  %v41_v36 = vld [vmem:[%s599_s0 + $0xc8] sm:$0xff]  ;;  %v40_v38 = vld [vmem:[%s599_s0 + $0xc0] sm:$0xff]  ;;  %v356_v39 = vpack.c.bf16 %v38_v33, %v34_v32  ;;  %v43_v42 = vld [vmem:[%s599_s0 + $0xd8] sm:$0xff]  ;;  %v375_v31 = vmov 1  }
   0xa   :  { %337 = vmatpush1.bf16.msra.mxu0 %v336_v18  ;;  %v45_v37 = vld [vmem:[%s599_s0 + $0xe8] sm:$0xff]  ;;  %v44_v41 = vld [vmem:[%s599_s0 + $0xe0] sm:$0xff]  ;;  %v47_v43 = vld [vmem:[%s599_s0 + $0xf8] sm:$0xff]  ;;  %366 = vset.pattern.permute.xlu1 %v375_v31  ;;  %v376_v32 = vmov 0  }
   0xb   :  { %353 = vmatpush1.bf16.msra.mxu1 %v352_v26  ;;  %339 = vmatprep.subr.bf16.mxu0 %v338_v27  ;;  %v342_v40 = vpack.c.bf16 %v45_v37, %v41_v36  ;;  %v358_v44 = vpack.c.bf16 %v47_v43, %v43_v42  ;;  %v42_v45 = vld [vmem:[%s599_s0 + $0xd0] sm:$0xff]  ;;  %v344_v47 = vpack.c.bf16 %v44_v41, %v40_v38  ;;  %v49_v49 = vld [vmem:[%s599_s0 + $0x108] sm:$0xff]  ;;  %v51_v50 = vld [vmem:[%s599_s0 + $0x118] sm:$0xff] }
   0xc   :  { %355 = vmatprep.subr.bf16.mxu1 %v354_v35  ;;  %v46_v46 = vld [vmem:[%s599_s0 + $0xf0] sm:$0xff]  ;;  %v48_v51 = vld [vmem:[%s599_s0 + $0x100] sm:$0xff]  ;;  %v15_v54 = vld [vmem:[%s600_s1 + $0x8] sm:$0xff]  ;;  %365 = vset.pattern.permute.xlu0 %v376_v32 }
   0xd   :  { %v360_v48 = vpack.c.bf16 %v46_v46, %v42_v45  ;;  %v14_v52 = vld [vmem:[%s600_s1] sm:$0xff]  ;;  %v50_v53 = vld [vmem:[%s599_s0 + $0x110] sm:$0xff] }
   0xe   :  { %341 = vmatpush1.bf16.msra.mxu0 %v340_v34  ;;  %v266_v33 = vld [vmem:[%s601_s2] sm:$0xff] }
   0xf   :  { %357 = vmatpush1.bf16.msra.mxu1 %v356_v39  ;;  %343 = vmatprep.subr.bf16.mxu0 %v342_v40 }
  0x10   :  { %359 = vmatprep.subr.bf16.mxu1 %v358_v44 }
  0x12   :  { %345 = vmatpush1.bf16.msra.mxu0 %v344_v47 }
  0x13   :  { %361 = vmatpush1.bf16.msra.mxu1 %v360_v48  ;;  %75 = vmatprep.subr.mxu0 %v49_v49 }
  0x14   :  { %152 = vmatprep.subr.mxu1 %v51_v50  ;;  %v267_v50 = vld [vmem:[%s601_s2 + $0x8] sm:$0xff] }
  0x16   :  { %76 = vmatpush1.msra.mxu0 %v48_v51 }
  0x17   :  { %326 = vmatmul.mubr.msk.f32.vlgmr.msra.gmra.mrb[0].mxu0 %vm52_vm0, %v14_v52  ;;  %153 = vmatpush1.msra.mxu1 %v50_v53 }
  0x18   :  { %328 = vmatmul.mubr.msk.f32.vlgmr.msra.gmra.mrb[0].mxu1 %vm52_vm0, %v14_v52  ;;  %129 = vmatprep.mubr.f32.mxu0 %v374_v3 }
  0x19   :  { %206 = vmatprep.mubr.f32.mxu1 %v374_v3 }
  0x1b   :  { %327 = vmatmul.mubr.msk.f32.gmra.mrb[2].mxu0 %vm52_vm0, %v15_v54 }
  0x1c   :  { %329 = vmatmul.mubr.msk.f32.gmra.mrb[2].mxu1 %vm52_vm0, %v15_v54 }
  0xea   :  { %v125_v55 = vpop.f32.mrb[0].mxu0 }
  0xeb   :  { %v515_v56 = vmax.f32 %v125_v55, 0.0  ;;  %v127_v57 = vpop.f32.mrb[1].mxu0  ;;  %v202_v58 = vpop.f32.mrb[0].mxu1 }
  0xec   :  { %v517_v59 = vmax.f32 %v127_v57, 0.0  ;;  %v519_v60 = vmax.f32 %v202_v58, 0.0  ;;  %v204_v61 = vpop.f32.mrb[1].mxu1 }
  0xed   :  { %v234_v62 = vmul.f32 %v515_v56, %v515_v56  ;;  %v523_v63 = vmax.f32 %v204_v61, 0.0 }
  0xee   :  { %v235_v0 = vmul.f32 %v517_v59, %v517_v59  ;;  %v131_v1 = vpop.f32.mrb[2].mxu0  ;;  %v221_v2 = vadd.f32 %v517_v59, %v515_v56  ;;  %v236_v7 = vmul.f32 %v519_v60, %v519_v60 }
  0xef   :  { %v529_v3 = vmax.f32 %v131_v1, 0.0  ;;  %v133_v4 = vpop.f32.mrb[3].mxu0  ;;  %v208_v5 = vpop.f32.mrb[2].mxu1  ;;  %v224_v6 = vsel %vm223_vm1, %v523_v63, 0.0  ;;  %v237_v8 = vmul.f32 %v523_v63, %v523_v63 }
  0xf0   :  { %v537_v9 = vmax.f32 %v133_v4, 0.0  ;;  %v539_v10 = vmax.f32 %v208_v5, 0.0  ;;  %v210_v11 = vpop.f32.mrb[3].mxu1  ;;  %v222_v12 = vadd.f32 %v221_v2, %v519_v60  ;;  %v242_v13 = vadd.f32 %v235_v0, %v234_v62 }
  0xf1   :  { %v238_v14 = vmul.f32 %v529_v3, %v529_v3  ;;  %v544_v15 = vmax.f32 %v210_v11, 0.0  ;;  %v244_v16 = vsel %vm223_vm1, %v237_v8, 0.0 }
  0xf2   :  { %v228_v17 = vadd.f32 %v537_v9, %v529_v3  ;;  %v239_v18 = vmul.f32 %v537_v9, %v537_v9  ;;  %v240_v19 = vmul.f32 %v539_v10, %v539_v10  ;;  %v225_v20 = vadd.f32 %v224_v6, %v222_v12 }
  0xf3   :  { %v241_v21 = vmul.f32 %v544_v15, %v544_v15  ;;  %v243_v22 = vadd.f32 %v242_v13, %v236_v7  ;;  %v230_v23 = vsel %vm223_vm1, %v544_v15, 0.0 }
  0xf4   :  { %226 = vadd.xlane.f32.xlu0 %v225_v20  ;;  %v229_v24 = vadd.f32 %v228_v17, %v539_v10  ;;  %v248_v25 = vadd.f32 %v239_v18, %v238_v14 }
  0xf5   :  { %v245_v26 = vadd.f32 %v244_v16, %v243_v22  ;;  %v250_v27 = vsel %vm223_vm1, %v241_v21, 0.0 }
  0xf6   :  { %v231_v28 = vadd.f32 %v230_v23, %v229_v24  ;;  %v249_v29 = vadd.f32 %v248_v25, %v240_v19 }
  0xf7   :  { %246 = vadd.xlane.f32.xlu1 %v245_v26 }
  0xf8   :  { %232 = vadd.xlane.f32.xlu0 %v231_v28  ;;  %v251_v30 = vadd.f32 %v250_v27, %v249_v29 }
  0xfb   :  { %252 = vadd.xlane.f32.xlu1 %v251_v30 }
 0x10c   :  { %298 = vperm.xlu1 %366, %v266_v33  }
 0x110   :  { %367 = vset.pattern.permute.xlu1 %v376_v32 }
 0x181   :  { %v227_v34 = vpop.xlane.xlu0 %226 }
 0x182   :  { %v254_v35 = vmul.f32 0.0025510204, %v227_v34 }
 0x184   :  { %v247_v36 = vpop.xlane.xlu1 %246  ;;  %v258_v37 = vmul.f32 %v254_v35, %v254_v35  ;;  %v268_v54 = vsub.f32 %v515_v56, %v254_v35  ;;  %v269_v55 = vsub.f32 %v517_v59, %v254_v35  ;;  %v270_v57 = vsub.f32 %v519_v60, %v254_v35 }
 0x185   :  { %v256_v38 = vmul.f32 0.0025510204, %v247_v36  ;;  %v233_v39 = vpop.xlane.xlu0 %232  ;;  %v271_v58 = vsub.f32 %v523_v63, %v254_v35 }
 0x186   :  { %v255_v40 = vmul.f32 0.0025510204, %v233_v39 }
 0x187   :  { %v260_v41 = vsub.f32 %v256_v38, %v258_v37 }
 0x188   :  { %v253_v42 = vpop.xlane.xlu1 %252  ;;  %v259_v43 = vmul.f32 %v255_v40, %v255_v40  ;;  %v272_v56 = vsub.f32 %v529_v3, %v255_v40  ;;  %v273_v59 = vsub.f32 %v537_v9, %v255_v40  ;;  %v274_v60 = vsub.f32 %v539_v10, %v255_v40 }
 0x189   :  { %v262_v44 = vadd.f32 1e-05, %v260_v41  ;;  %v257_v45 = vmul.f32 0.0025510204, %v253_v42  ;;  %v275_v63 = vsub.f32 %v544_v15, %v255_v40 }
 0x18b   :  { %370 = vrsqrt.f32 %v262_v44  ;;  %v261_v46 = vsub.f32 %v257_v45, %v259_v43 }
 0x18c   :  { %v299_v53 = vpop.permute.xlu1 %298 }
 0x18d   :  { %v263_v47 = vadd.f32 1e-05, %v261_v46 }
 0x18f   :  { %372 = vrsqrt.f32 %v263_v47 }
 0x195   :  { %v371_v48 = vpop.eup %370 }
 0x196   :  { %v276_v49 = vmul.f32 %v371_v48, %v266_v33 }
 0x198   :  { %280 = vperm.xlu0 %365, %v276_v49  }
 0x199   :  { %v373_v51 = vpop.eup %372 }
 0x19a   :  { %v277_v52 = vmul.f32 %v373_v51, %v267_v50 }
 0x19c   :  { %285 = vperm.xlu1 %367, %v277_v52   ;;  %369 = vset.pattern.permute.xlu0 %v375_v31 }
 0x1a0   :  { %368 = vset.pattern.permute.xlu1 %v375_v31 }
 0x1a1   :  { %303 = vperm.xlu1 %368, %v267_v50  }
 0x217   :  { %v281_v61 = vpop.permute.xlu0 %280 }
 0x218   :  { %v288_v62 = vmul.f32 %v281_v61, %v268_v54  ;;  %v289_v0 = vmul.f32 %v281_v61, %v269_v55  ;;  %v290_v1 = vmul.f32 %v281_v61, %v270_v57  ;;  %v291_v2 = vmul.f32 %v281_v61, %v271_v58 }
 0x21a   :  { %v306_v4 = vadd.f32 %v299_v53, %v288_v62  ;;  %v307_v5 = vadd.f32 %v299_v53, %v289_v0  ;;  %v308_v6 = vadd.f32 %v299_v53, %v290_v1  ;;  %v309_v7 = vadd.f32 %v299_v53, %v291_v2 }
 0x21b   :  { %v286_v8 = vpop.permute.xlu1 %285 }
 0x21c   :  { %314 = vst [vmem:[%s602_s3] sm:$0xff] %v306_v4  ;;  %315 = vst [vmem:[%s602_s3 + $0x8] sm:$0xff] %v307_v5  ;;  %v292_v11 = vmul.f32 %v286_v8, %v272_v56  ;;  %v293_v12 = vmul.f32 %v286_v8, %v273_v59  ;;  %v294_v13 = vmul.f32 %v286_v8, %v274_v60 }
 0x21d   :  { %316 = vst [vmem:[%s602_s3 + $0x10] sm:$0xff] %v308_v6  ;;  %317 = vst.msk [vmem:[%s602_s3 + $0x18] sm:$0xff] %vm223_vm1, %v309_v7  ;;  %v295_v14 = vmul.f32 %v286_v8, %v275_v63 }
 0x220   :  { %v304_v16 = vpop.permute.xlu1 %303 }
 0x221   :  { %v310_v17 = vadd.f32 %v304_v16, %v292_v11  ;;  %v311_v18 = vadd.f32 %v304_v16, %v293_v12  ;;  %v312_v19 = vadd.f32 %v304_v16, %v294_v13  ;;  %v313_v20 = vadd.f32 %v304_v16, %v295_v14 }
 0x223   :  { %318 = vst [vmem:[%s602_s3 + $0x20] sm:$0xff] %v310_v17  ;;  %319 = vst [vmem:[%s602_s3 + $0x28] sm:$0xff] %v311_v18 }
 0x224   :  { %320 = vst [vmem:[%s602_s3 + $0x30] sm:$0xff] %v312_v19  ;;  %321 = vst.msk [vmem:[%s602_s3 + $0x38] sm:$0xff] %vm223_vm1, %v313_v20 }

// kernel: mnist_medium_forward.11
= control target key start
LH: loop header
LB: loop body
LE: loop exit
PB: predicated region body
PF: predicated region fallthrough
CT: control target
= control target key end

     0   :  { %v242_v0 = vmov 0.0|0.0   ;;  %vm36_vm0 = vcmask 130048   ;;  %vm120_vm1 = vcmask 408576   ;;  %v243_v44 = vmov 1   ;;  %s367_s0 = inlined_call_operand.vmem [shape: f32[144,50], index: 0, kind: input, shape index: {}]   ;;  %s368_s1 = inlined_call_operand.vmem [shape: f32[16,144], index: 1, kind: input, shape index: {}]   ;;  %s369_s2 = inlined_call_operand.vmem [shape: f32[16,2], index: 2, kind: input, shape index: {}]   ;;  %s370_s3 = inlined_call_operand.vmem [shape: f32[16,50], index: 3, kind: output, shape index: {}]  }
   0x1   :  { %185 = vmatprep.subr.bf16.mxu0 %v242_v0  ;;  %v18_v1 = vld [vmem:[%s367_s0] sm:$0xff]  ;;  %v19_v2 = vld [vmem:[%s367_s0 + $0x8] sm:$0xff]  ;;  %212 = vmatprep.subr.bf16.mxu1 %v242_v0  ;;  %v20_v3 = vld [vmem:[%s367_s0 + $0x10] sm:$0xff]  ;;  %v244_v45 = vmov 0  }
   0x2   :  { %v186_v4 = vpack.c.bf16 %v19_v2, %v18_v1  ;;  %v21_v5 = vld [vmem:[%s367_s0 + $0x18] sm:$0xff]  ;;  %v22_v7 = vld [vmem:[%s367_s0 + $0x20] sm:$0xff]  ;;  %v23_v8 = vld [vmem:[%s367_s0 + $0x28] sm:$0xff]  ;;  %234 = vset.pattern.permute.xlu1 %v243_v44  ;;  %233 = vset.pattern.permute.xlu0 %v244_v45 }
   0x3   :  { %v189_v6 = vpack.c.bf16 %v21_v5, %v20_v3  ;;  %v15_v9 = vld [vmem:[%s368_s1 + $0x8] sm:$0xff]  ;;  %v17_v10 = vld [vmem:[%s368_s1 + $0x18] sm:$0xff]  ;;  %v192_v11 = vpack.c.bf16 %v23_v8, %v22_v7  ;;  %v24_v12 = vld [vmem:[%s367_s0 + $0x30] sm:$0xff] }
   0x4   :  { %187 = vmatpush1.bf16.msra.mxu0 %v186_v4  ;;  %221 = vmatpush1.bf16.msra.mxu1 %v186_v4  ;;  %v25_v13 = vld [vmem:[%s367_s0 + $0x38] sm:$0xff]  ;;  %v26_v15 = vld [vmem:[%s367_s0 + $0x40] sm:$0xff]  ;;  %v27_v16 = vld [vmem:[%s367_s0 + $0x48] sm:$0xff] }
   0x5   :  { %188 = vmatprep.subr.bf16.mxu0 %v242_v0  ;;  %213 = vmatprep.subr.bf16.mxu1 %v242_v0  ;;  %v195_v14 = vpack.c.bf16 %v25_v13, %v24_v12  ;;  %v198_v17 = vpack.c.bf16 %v27_v16, %v26_v15  ;;  %v28_v18 = vld [vmem:[%s367_s0 + $0x50] sm:$0xff]  ;;  %v29_v19 = vld [vmem:[%s367_s0 + $0x58] sm:$0xff]  ;;  %v30_v21 = vld [vmem:[%s367_s0 + $0x60] sm:$0xff] }
   0x6   :  { %183 = vmatprep.mubr.msk.f32.mxu0 %vm36_vm0, %v15_v9  ;;  %184 = vmatprep.mubr.msk.f32.mxu1 %vm36_vm0, %v17_v10  ;;  %v201_v20 = vpack.c.bf16 %v29_v19, %v28_v18  ;;  %v31_v22 = vld [vmem:[%s367_s0 + $0x68] sm:$0xff]  ;;  %v32_v24 = vld [vmem:[%s367_s0 + $0x70] sm:$0xff]  ;;  %v33_v25 = vld [vmem:[%s367_s0 + $0x78] sm:$0xff] }
   0x7   :  { %v204_v23 = vpack.c.bf16 %v31_v22, %v30_v21  ;;  %v207_v26 = vpack.c.bf16 %v33_v25, %v32_v24  ;;  %v34_v27 = vld [vmem:[%s367_s0 + $0x80] sm:$0xff]  ;;  %v35_v28 = vld [vmem:[%s367_s0 + $0x88] sm:$0xff]  ;;  %v16_v31 = vld [vmem:[%s368_s1 + $0x10] sm:$0xff] }
   0x8   :  { %190 = vmatpush1.bf16.msra.mxu0 %v189_v6  ;;  %222 = vmatpush1.bf16.msra.mxu1 %v189_v6  ;;  %v210_v29 = vpack.c.bf16 %v35_v28, %v34_v27  ;;  %v14_v30 = vld [vmem:[%s368_s1] sm:$0xff]  ;;  %v148_v63 = vld [vmem:[%s369_s2 + $0x8] sm:$0xff] }
   0x9   :  { %191 = vmatprep.subr.bf16.mxu0 %v242_v0  ;;  %214 = vmatprep.subr.bf16.mxu1 %v242_v0  ;;  %v147_v46 = vld [vmem:[%s369_s2] sm:$0xff] }
   0xc   :  { %193 = vmatpush1.bf16.msra.mxu0 %v192_v11  ;;  %223 = vmatpush1.bf16.msra.mxu1 %v192_v11 }
   0xd   :  { %194 = vmatprep.subr.bf16.mxu0 %v242_v0  ;;  %215 = vmatprep.subr.bf16.mxu1 %v242_v0 }
  0x10   :  { %196 = vmatpush1.bf16.msra.mxu0 %v195_v14  ;;  %224 = vmatpush1.bf16.msra.mxu1 %v195_v14 }
  0x11   :  { %197 = vmatprep.subr.bf16.mxu0 %v242_v0  ;;  %216 = vmatprep.subr.bf16.mxu1 %v242_v0 }
  0x14   :  { %199 = vmatpush1.bf16.msra.mxu0 %v198_v17  ;;  %225 = vmatpush1.bf16.msra.mxu1 %v198_v17 }
  0x15   :  { %200 = vmatprep.subr.bf16.mxu0 %v242_v0  ;;  %217 = vmatprep.subr.bf16.mxu1 %v242_v0 }
  0x18   :  { %202 = vmatpush1.bf16.msra.mxu0 %v201_v20  ;;  %226 = vmatpush1.bf16.msra.mxu1 %v201_v20 }
  0x19   :  { %203 = vmatprep.subr.bf16.mxu0 %v242_v0  ;;  %218 = vmatprep.subr.bf16.mxu1 %v242_v0 }
  0x1c   :  { %205 = vmatpush1.bf16.msra.mxu0 %v204_v23  ;;  %227 = vmatpush1.bf16.msra.mxu1 %v204_v23 }
  0x1d   :  { %206 = vmatprep.subr.bf16.mxu0 %v242_v0  ;;  %219 = vmatprep.subr.bf16.mxu1 %v242_v0 }
  0x20   :  { %208 = vmatpush1.bf16.msra.mxu0 %v207_v26  ;;  %228 = vmatpush1.bf16.msra.mxu1 %v207_v26 }
  0x21   :  { %209 = vmatprep.subr.bf16.mxu0 %v242_v0  ;;  %220 = vmatprep.subr.bf16.mxu1 %v242_v0 }
  0x24   :  { %211 = vmatpush1.bf16.msra.mxu0 %v210_v29  ;;  %229 = vmatpush1.bf16.msra.mxu1 %v210_v29 }
  0x27   :  { %108 = vmatmul.mubr.f32.vlgmr.msra.gmra.mrb[0].mxu0 %v14_v30  ;;  %113 = vmatmul.mubr.f32.vlgmr.msra.gmra.mrb[0].mxu1 %v16_v31 }
  0xfa   :  { %v109_v32 = vpop.f32.mrb[0].mxu0  ;;  %v114_v33 = vpop.f32.mrb[0].mxu1 }
  0xfb   :  { %v118_v34 = vmax.f32 %v109_v32, 0.0  ;;  %v111_v35 = vpop.f32.mrb[1].mxu0  ;;  %v119_v36 = vmax.f32 %v114_v33, 0.0  ;;  %v116_v37 = vpop.f32.mrb[1].mxu1 }
  0xfd   :  { %v121_v38 = vsel %vm120_vm1, %v118_v34, 0.0  ;;  %v127_v39 = vmul.f32 %v118_v34, %v118_v34  ;;  %v128_v40 = vmul.f32 %v119_v36, %v119_v36  ;;  %v124_v42 = vsel %vm120_vm1, %v119_v36, 0.0 }
  0xfe   :  { %122 = vadd.xlane.f32.xlu0 %v121_v38 }
  0xff   :  { %v129_v41 = vsel %vm120_vm1, %v127_v39, 0.0  ;;  %v132_v43 = vsel %vm120_vm1, %v128_v40, 0.0 }
 0x100   :  { %130 = vadd.xlane.f32.xlu1 %v129_v41 }
 0x102   :  { %125 = vadd.xlane.f32.xlu0 %v124_v42 }
 0x104   :  { %133 = vadd.xlane.f32.xlu1 %v132_v43 }
 0x115   :  { %167 = vperm.xlu1 %234, %v147_v46  }
 0x119   :  { %235 = vset.pattern.permute.xlu1 %v244_v45 }
 0x18b   :  { %v123_v47 = vpop.xlane.xlu0 %122 }
 0x18c   :  { %v135_v48 = vmul.f32 0.02, %v123_v47 }
 0x18d   :  { %v131_v49 = vpop.xlane.xlu1 %130 }
 0x18e   :  { %v139_v50 = vmul.f32 %v135_v48, %v135_v48  ;;  %v137_v51 = vmul.f32 0.02, %v131_v49  ;;  %v149_v3 = vsub.f32 %v118_v34, %v135_v48 }
 0x18f   :  { %v126_v52 = vpop.xlane.xlu0 %125 }
 0x190   :  { %v141_v53 = vsub.f32 %v137_v51, %v139_v50  ;;  %v136_v54 = vmul.f32 0.02, %v126_v52 }
 0x191   :  { %v134_v55 = vpop.xlane.xlu1 %133 }
 0x192   :  { %v143_v56 = vadd.f32 1e-05, %v141_v53  ;;  %v140_v57 = vmul.f32 %v136_v54, %v136_v54  ;;  %v138_v58 = vmul.f32 0.02, %v134_v55  ;;  %v150_v8 = vsub.f32 %v119_v36, %v136_v54 }
 0x194   :  { %238 = vrsqrt.f32 %v143_v56  ;;  %v142_v59 = vsub.f32 %v138_v58, %v140_v57 }
 0x195   :  { %v168_v2 = vpop.permute.xlu1 %167 }
 0x196   :  { %v144_v60 = vadd.f32 1e-05, %v142_v59 }
 0x198   :  { %240 = vrsqrt.f32 %v144_v60 }
 0x19e   :  { %v239_v61 = vpop.eup %238 }
 0x19f   :  { %v151_v62 = vmul.f32 %v239_v61, %v147_v46 }
 0x1a1   :  { %155 = vperm.xlu0 %233, %v151_v62  }
 0x1a2   :  { %v241_v0 = vpop.eup %240 }
 0x1a3   :  { %v152_v1 = vmul.f32 %v241_v0, %v148_v63 }
 0x1a5   :  { %160 = vperm.xlu1 %235, %v152_v1   ;;  %237 = vset.pattern.permute.xlu0 %v243_v44 }
 0x1a9   :  { %236 = vset.pattern.permute.xlu1 %v243_v44 }
 0x1aa   :  { %172 = vperm.xlu1 %236, %v148_v63  }
 0x220   :  { %v156_v4 = vpop.permute.xlu0 %155 }
 0x221   :  { %v163_v5 = vmul.f32 %v156_v4, %v149_v3 }
 0x223   :  { %v175_v6 = vadd.f32 %v168_v2, %v163_v5 }
 0x224   :  { %v161_v7 = vpop.permute.xlu1 %160 }
 0x225   :  { %177 = vst.msk [vmem:[%s370_s3] sm:$0xff] %vm120_vm1, %v175_v6  ;;  %v164_v9 = vmul.f32 %v161_v7, %v150_v8 }
 0x229   :  { %v173_v10 = vpop.permute.xlu1 %172 }
 0x22a   :  { %v176_v11 = vadd.f32 %v173_v10, %v164_v9 }
 0x22c   :  { %178 = vst.msk [vmem:[%s370_s3 + $0x8] sm:$0xff] %vm120_vm1, %v176_v11 }

// kernel: mnist_medium_forward.12
= control target key start
LH: loop header
LB: loop body
LE: loop exit
PB: predicated region body
PF: predicated region fallthrough
CT: control target
= control target key end

     0   :  { %v242_v0 = vmov 0.0|0.0   ;;  %vm36_vm0 = vcmask 130048   ;;  %vm120_vm1 = vcmask 146432   ;;  %v243_v44 = vmov 1   ;;  %s367_s0 = inlined_call_operand.vmem [shape: f32[144,18], index: 0, kind: input, shape index: {}]   ;;  %s368_s1 = inlined_call_operand.vmem [shape: f32[16,144], index: 1, kind: input, shape index: {}]   ;;  %s369_s2 = inlined_call_operand.vmem [shape: f32[16,2], index: 2, kind: input, shape index: {}]   ;;  %s370_s3 = inlined_call_operand.vmem [shape: f32[16,18], index: 3, kind: output, shape index: {}]  }
   0x1   :  { %185 = vmatprep.subr.bf16.mxu0 %v242_v0  ;;  %v18_v1 = vld [vmem:[%s367_s0] sm:$0xff]  ;;  %v19_v2 = vld [vmem:[%s367_s0 + $0x8] sm:$0xff]  ;;  %212 = vmatprep.subr.bf16.mxu1 %v242_v0  ;;  %v20_v3 = vld [vmem:[%s367_s0 + $0x10] sm:$0xff]  ;;  %v244_v45 = vmov 0  }
   0x2   :  { %v186_v4 = vpack.c.bf16 %v19_v2, %v18_v1  ;;  %v21_v5 = vld [vmem:[%s367_s0 + $0x18] sm:$0xff]  ;;  %v22_v7 = vld [vmem:[%s367_s0 + $0x20] sm:$0xff]  ;;  %v23_v8 = vld [vmem:[%s367_s0 + $0x28] sm:$0xff]  ;;  %234 = vset.pattern.permute.xlu1 %v243_v44  ;;  %233 = vset.pattern.permute.xlu0 %v244_v45 }
   0x3   :  { %v189_v6 = vpack.c.bf16 %v21_v5, %v20_v3  ;;  %v15_v9 = vld [vmem:[%s368_s1 + $0x8] sm:$0xff]  ;;  %v17_v10 = vld [vmem:[%s368_s1 + $0x18] sm:$0xff]  ;;  %v192_v11 = vpack.c.bf16 %v23_v8, %v22_v7  ;;  %v24_v12 = vld [vmem:[%s367_s0 + $0x30] sm:$0xff] }
   0x4   :  { %187 = vmatpush1.bf16.msra.mxu0 %v186_v4  ;;  %221 = vmatpush1.bf16.msra.mxu1 %v186_v4  ;;  %v25_v13 = vld [vmem:[%s367_s0 + $0x38] sm:$0xff]  ;;  %v26_v15 = vld [vmem:[%s367_s0 + $0x40] sm:$0xff]  ;;  %v27_v16 = vld [vmem:[%s367_s0 + $0x48] sm:$0xff] }
   0x5   :  { %188 = vmatprep.subr.bf16.mxu0 %v242_v0  ;;  %213 = vmatprep.subr.bf16.mxu1 %v242_v0  ;;  %v195_v14 = vpack.c.bf16 %v25_v13, %v24_v12  ;;  %v198_v17 = vpack.c.bf16 %v27_v16, %v26_v15  ;;  %v28_v18 = vld [vmem:[%s367_s0 + $0x50] sm:$0xff]  ;;  %v29_v19 = vld [vmem:[%s367_s0 + $0x58] sm:$0xff]  ;;  %v30_v21 = vld [vmem:[%s367_s0 + $0x60] sm:$0xff] }
   0x6   :  { %183 = vmatprep.mubr.msk.f32.mxu0 %vm36_vm0, %v15_v9  ;;  %184 = vmatprep.mubr.msk.f32.mxu1 %vm36_vm0, %v17_v10  ;;  %v201_v20 = vpack.c.bf16 %v29_v19, %v28_v18  ;;  %v31_v22 = vld [vmem:[%s367_s0 + $0x68] sm:$0xff]  ;;  %v32_v24 = vld [vmem:[%s367_s0 + $0x70] sm:$0xff]  ;;  %v33_v25 = vld [vmem:[%s367_s0 + $0x78] sm:$0xff] }
   0x7   :  { %v204_v23 = vpack.c.bf16 %v31_v22, %v30_v21  ;;  %v207_v26 = vpack.c.bf16 %v33_v25, %v32_v24  ;;  %v34_v27 = vld [vmem:[%s367_s0 + $0x80] sm:$0xff]  ;;  %v35_v28 = vld [vmem:[%s367_s0 + $0x88] sm:$0xff]  ;;  %v16_v31 = vld [vmem:[%s368_s1 + $0x10] sm:$0xff] }
   0x8   :  { %190 = vmatpush1.bf16.msra.mxu0 %v189_v6  ;;  %222 = vmatpush1.bf16.msra.mxu1 %v189_v6  ;;  %v210_v29 = vpack.c.bf16 %v35_v28, %v34_v27  ;;  %v14_v30 = vld [vmem:[%s368_s1] sm:$0xff]  ;;  %v148_v63 = vld [vmem:[%s369_s2 + $0x8] sm:$0xff] }
   0x9   :  { %191 = vmatprep.subr.bf16.mxu0 %v242_v0  ;;  %214 = vmatprep.subr.bf16.mxu1 %v242_v0  ;;  %v147_v46 = vld [vmem:[%s369_s2] sm:$0xff] }
   0xc   :  { %193 = vmatpush1.bf16.msra.mxu0 %v192_v11  ;;  %223 = vmatpush1.bf16.msra.mxu1 %v192_v11 }
   0xd   :  { %194 = vmatprep.subr.bf16.mxu0 %v242_v0  ;;  %215 = vmatprep.subr.bf16.mxu1 %v242_v0 }
  0x10   :  { %196 = vmatpush1.bf16.msra.mxu0 %v195_v14  ;;  %224 = vmatpush1.bf16.msra.mxu1 %v195_v14 }
  0x11   :  { %197 = vmatprep.subr.bf16.mxu0 %v242_v0  ;;  %216 = vmatprep.subr.bf16.mxu1 %v242_v0 }
  0x14   :  { %199 = vmatpush1.bf16.msra.mxu0 %v198_v17  ;;  %225 = vmatpush1.bf16.msra.mxu1 %v198_v17 }
  0x15   :  { %200 = vmatprep.subr.bf16.mxu0 %v242_v0  ;;  %217 = vmatprep.subr.bf16.mxu1 %v242_v0 }
  0x18   :  { %202 = vmatpush1.bf16.msra.mxu0 %v201_v20  ;;  %226 = vmatpush1.bf16.msra.mxu1 %v201_v20 }
  0x19   :  { %203 = vmatprep.subr.bf16.mxu0 %v242_v0  ;;  %218 = vmatprep.subr.bf16.mxu1 %v242_v0 }
  0x1c   :  { %205 = vmatpush1.bf16.msra.mxu0 %v204_v23  ;;  %227 = vmatpush1.bf16.msra.mxu1 %v204_v23 }
  0x1d   :  { %206 = vmatprep.subr.bf16.mxu0 %v242_v0  ;;  %219 = vmatprep.subr.bf16.mxu1 %v242_v0 }
  0x20   :  { %208 = vmatpush1.bf16.msra.mxu0 %v207_v26  ;;  %228 = vmatpush1.bf16.msra.mxu1 %v207_v26 }
  0x21   :  { %209 = vmatprep.subr.bf16.mxu0 %v242_v0  ;;  %220 = vmatprep.subr.bf16.mxu1 %v242_v0 }
  0x24   :  { %211 = vmatpush1.bf16.msra.mxu0 %v210_v29  ;;  %229 = vmatpush1.bf16.msra.mxu1 %v210_v29 }
  0x27   :  { %108 = vmatmul.mubr.f32.vlgmr.msra.gmra.mrb[0].mxu0 %v14_v30  ;;  %113 = vmatmul.mubr.f32.vlgmr.msra.gmra.mrb[0].mxu1 %v16_v31 }
  0xfa   :  { %v109_v32 = vpop.f32.mrb[0].mxu0  ;;  %v114_v33 = vpop.f32.mrb[0].mxu1 }
  0xfb   :  { %v118_v34 = vmax.f32 %v109_v32, 0.0  ;;  %v111_v35 = vpop.f32.mrb[1].mxu0  ;;  %v119_v36 = vmax.f32 %v114_v33, 0.0  ;;  %v116_v37 = vpop.f32.mrb[1].mxu1 }
  0xfd   :  { %v121_v38 = vsel %vm120_vm1, %v118_v34, 0.0  ;;  %v127_v39 = vmul.f32 %v118_v34, %v118_v34  ;;  %v128_v40 = vmul.f32 %v119_v36, %v119_v36  ;;  %v124_v42 = vsel %vm120_vm1, %v119_v36, 0.0 }
  0xfe   :  { %122 = vadd.xlane.f32.xlu0 %v121_v38 }
  0xff   :  { %v129_v41 = vsel %vm120_vm1, %v127_v39, 0.0  ;;  %v132_v43 = vsel %vm120_vm1, %v128_v40, 0.0 }
 0x100   :  { %130 = vadd.xlane.f32.xlu1 %v129_v41 }
 0x102   :  { %125 = vadd.xlane.f32.xlu0 %v124_v42 }
 0x104   :  { %133 = vadd.xlane.f32.xlu1 %v132_v43 }
 0x115   :  { %167 = vperm.xlu1 %234, %v147_v46  }
 0x119   :  { %235 = vset.pattern.permute.xlu1 %v244_v45 }
 0x18b   :  { %v123_v47 = vpop.xlane.xlu0 %122 }
 0x18c   :  { %v135_v48 = vmul.f32 0.055555556, %v123_v47 }
 0x18d   :  { %v131_v49 = vpop.xlane.xlu1 %130 }
 0x18e   :  { %v139_v50 = vmul.f32 %v135_v48, %v135_v48  ;;  %v137_v51 = vmul.f32 0.055555556, %v131_v49  ;;  %v149_v3 = vsub.f32 %v118_v34, %v135_v48 }
 0x18f   :  { %v126_v52 = vpop.xlane.xlu0 %125 }
 0x190   :  { %v141_v53 = vsub.f32 %v137_v51, %v139_v50  ;;  %v136_v54 = vmul.f32 0.055555556, %v126_v52 }
 0x191   :  { %v134_v55 = vpop.xlane.xlu1 %133 }
 0x192   :  { %v143_v56 = vadd.f32 1e-05, %v141_v53  ;;  %v140_v57 = vmul.f32 %v136_v54, %v136_v54  ;;  %v138_v58 = vmul.f32 0.055555556, %v134_v55  ;;  %v150_v8 = vsub.f32 %v119_v36, %v136_v54 }
 0x194   :  { %238 = vrsqrt.f32 %v143_v56  ;;  %v142_v59 = vsub.f32 %v138_v58, %v140_v57 }
 0x195   :  { %v168_v2 = vpop.permute.xlu1 %167 }
 0x196   :  { %v144_v60 = vadd.f32 1e-05, %v142_v59 }
 0x198   :  { %240 = vrsqrt.f32 %v144_v60 }
 0x19e   :  { %v239_v61 = vpop.eup %238 }
 0x19f   :  { %v151_v62 = vmul.f32 %v239_v61, %v147_v46 }
 0x1a1   :  { %155 = vperm.xlu0 %233, %v151_v62  }
 0x1a2   :  { %v241_v0 = vpop.eup %240 }
 0x1a3   :  { %v152_v1 = vmul.f32 %v241_v0, %v148_v63 }
 0x1a5   :  { %160 = vperm.xlu1 %235, %v152_v1   ;;  %237 = vset.pattern.permute.xlu0 %v243_v44 }
 0x1a9   :  { %236 = vset.pattern.permute.xlu1 %v243_v44 }
 0x1aa   :  { %172 = vperm.xlu1 %236, %v148_v63  }
 0x220   :  { %v156_v4 = vpop.permute.xlu0 %155 }
 0x221   :  { %v163_v5 = vmul.f32 %v156_v4, %v149_v3 }
 0x223   :  { %v175_v6 = vadd.f32 %v168_v2, %v163_v5 }
 0x224   :  { %v161_v7 = vpop.permute.xlu1 %160 }
 0x225   :  { %177 = vst.msk [vmem:[%s370_s3] sm:$0xff] %vm120_vm1, %v175_v6  ;;  %v164_v9 = vmul.f32 %v161_v7, %v150_v8 }
 0x229   :  { %v173_v10 = vpop.permute.xlu1 %172 }
 0x22a   :  { %v176_v11 = vadd.f32 %v173_v10, %v164_v9 }
 0x22c   :  { %178 = vst.msk [vmem:[%s370_s3 + $0x8] sm:$0xff] %vm120_vm1, %v176_v11 }

// kernel: mnist_medium_forward.13
= control target key start
LH: loop header
LB: loop body
LE: loop exit
PB: predicated region body
PF: predicated region fallthrough
CT: control target
= control target key end

     0   :  { %vm15_vm0 = vcmask 130048   ;;  %vm99_vm1 = vcmask 9216   ;;  %vm97_vm2 = vcmask 15360   ;;  %s196_s0 = inlined_call_operand.vmem [shape: f32[16,2], index: 0, kind: input, shape index: {}]   ;;  %s197_s1 = inlined_call_operand.vmem [shape: f32[10,16], index: 1, kind: input, shape index: {}]   ;;  %s198_s2 = inlined_call_operand.vmem [shape: f32[10,2], index: 2, kind: output, shape index: {}]  }
   0x1   :  { %v13_v0 = vld [vmem:[%s196_s0] sm:$0xff]  ;;  %v14_v1 = vld [vmem:[%s196_s0 + $0x8] sm:$0xff] }
   0x2   :  { %v11_v2 = vld [vmem:[%s197_s1] sm:$0xff]  ;;  %v147_v3 = vpack.c.bf16 %v14_v1, %v13_v0  ;;  %v12_v4 = vld [vmem:[%s197_s1 + $0x8] sm:$0x3] }
   0x3   :  { %144 = vmatprep.mubr.msk.f32.mxu0 %vm15_vm0, %v11_v2 }
   0x4   :  { %148 = vmatprep.subr.bf16.mxu0 %v147_v3 }
   0x5   :  { %150 = vmatpush3.bf16.msra.mxu0 %v147_v3 }
   0x8   :  { %145 = vmatmul.mubr.msk.f32.vlgmr.msra.gmra.mrb[0].mxu0 %vm15_vm0, %v12_v4 }
  0xdb   :  { %v146_v5 = vpop.f32.mrb[0].mxu0 }
  0xdc   :  { %v100_v6 = vsel %vm99_vm1, %v146_v5, -inf  ;;  %v88_v7 = vpop.f32.mrb[1].mxu0 }
  0xdd   :  { %v98_v8 = vsel %vm97_vm2, %v88_v7, -inf }
  0xde   :  { %v101_v9 = vmax.f32 %v98_v8, %v100_v6 }
  0xe0   :  { %v102_v10 = vrot.slane %v101_v9, 4 }
  0xe2   :  { %v103_v11 = vmax.f32 %v101_v9, %v102_v10 }
  0xe4   :  { %v104_v12 = vrot.slane %v103_v11, 2 }
  0xe6   :  { %v105_v13 = vmax.f32 %v103_v11, %v104_v12 }
  0xe8   :  { %v106_v14 = vrot.slane %v105_v13, 1 }
  0xea   :  { %v107_v15 = vmax.f32 %v105_v13, %v106_v14 }
  0xec   :  { %v108_v16 = vsub.f32 %v88_v7, %v107_v15  ;;  %v109_v17 = vsub.f32 %v146_v5, %v107_v15 }
  0xee   :  { %v110_v18 = vmul.f32 1.442695, %v108_v16  ;;  %v112_v19 = vmul.f32 1.442695, %v109_v17 }
  0xf0   :  { %151 = vpow2.f32 %v110_v18 }
  0xf1   :  { %153 = vpow2.f32 %v112_v19 }
  0xfa   :  { %v152_v20 = vpop.eup %151 }
  0xfb   :  { %v154_v21 = vpop.eup %153  ;;  %v114_v22 = vsel %vm97_vm2, %v152_v20, 0.0 }
  0xfc   :  { %v115_v23 = vsel %vm99_vm1, %v154_v21, 0.0 }
  0xfd   :  { %v116_v24 = vadd.f32 %v115_v23, %v114_v22 }
  0xff   :  { %v117_v25 = vrot.slane %v116_v24, 4 }
 0x101   :  { %v118_v26 = vadd.f32 %v117_v25, %v116_v24 }
 0x103   :  { %v119_v27 = vrot.slane %v118_v26, 2 }
 0x105   :  { %v120_v28 = vadd.f32 %v119_v27, %v118_v26 }
 0x107   :  { %v121_v29 = vrot.slane %v120_v28, 1 }
 0x109   :  { %v122_v30 = vadd.f32 %v121_v29, %v120_v28 }
 0x10b   :  { %155 = vlog2.f32 %v122_v30 }
 0x115   :  { %v156_v31 = vpop.eup %155 }
 0x116   :  { %v124_v32 = vmul.f32 0.6931472, %v156_v31 }
 0x118   :  { %v125_v33 = vadd.f32 %v124_v32, %v107_v15 }
 0x11a   :  { %v126_v34 = vsub.f32 %v88_v7, %v125_v33  ;;  %v127_v35 = vsub.f32 %v146_v5, %v125_v33 }
 0x11c   :  { %128 = vst.msk [vmem:[%s198_s2] sm:$0xff] %vm97_vm2, %v126_v34 }
 0x11d   :  { %129 = vst.msk [vmem:[%s198_s2 + $0x8] sm:$0x3] %vm99_vm1, %v127_v35 }

</bundles_post_ra>
